<compile_context>
chip_gen: v7x
topology: tpu7x:2x2x1
jax: 0.10.0
libtpu: 0.0.40
codegen_flags: <defaults>
</compile_context>

<pallas_src>
import functools

import jax
import jax.numpy as jnp
from jax.experimental import pallas as pl
from jax.experimental.pallas import tpu as pltpu


# ---------------------------------------------------------------------------
# Fused encoder kernel
# ---------------------------------------------------------------------------
def _encoder_kernel(*refs, spatial, eps, num_layers, tb):
    # refs layout:
    #   [0]                 : layer-0 patches  [tb*OH0*OW0, 9*C]
    #   [1 : 1+2L]          : (w, b) per conv layer; w: [kh*kw*Cin, O], b: [1, O]
    #   [1+2L : 5+2L]       : fc_w [flat, Z], fc_b [1, Z], ln_g [1, Z], ln_b [1, Z]
    #   [5+2L]              : output block [tb, Z]
    x_ref = refs[0]
    w_refs = refs[1:1 + 2 * num_layers:2]
    b_refs = refs[2:2 + 2 * num_layers:2]
    fcw_ref, fcb_ref, g_ref, beta_ref = refs[1 + 2 * num_layers:5 + 2 * num_layers]
    o_ref = refs[5 + 2 * num_layers]

    # ---- layer 0: pre-im2col'd patches -> one matmul + bias + ReLU ----------
    oh, ow = spatial[0]
    y = jnp.dot(x_ref[...], w_refs[0][...], preferred_element_type=jnp.float32)
    y = jnp.maximum(y + b_refs[0][...], 0.0)               # [tb*oh*ow, nf]
    x = y.reshape(tb, oh, ow, y.shape[-1])

    # ---- layers 1..L-1: in-kernel im2col (9 shifted windows concatenated
    #      along channels) -> one lane-dense matmul per layer (K = 9*nf) ------
    for l in range(1, num_layers):
        oh, ow = spatial[l]
        cin = x.shape[-1]
        cols = [x[:, i:i + oh, j:j + ow, :] for i in range(3) for j in range(3)]
        patch = jnp.concatenate(cols, axis=-1).reshape(tb * oh * ow, 9 * cin)
        y = jnp.dot(patch, w_refs[l][...], preferred_element_type=jnp.float32)
        y = jnp.maximum(y + b_refs[l][...], 0.0)
        x = y.reshape(tb, oh, ow, y.shape[-1])

    # ---- fc (NHWC flatten order matches the pre-permuted fc weight) + LN ----
    h = x.reshape(tb, -1)                                   # [tb, oh*ow*nf]
    y = jnp.dot(h, fcw_ref[...], preferred_element_type=jnp.float32) + fcb_ref[...]
    mean = jnp.mean(y, axis=-1, keepdims=True)
    var = jnp.mean(jnp.square(y - mean), axis=-1, keepdims=True)
    y = (y - mean) * jax.lax.rsqrt(var + eps)
    o_ref[...] = (y * g_ref[...] + beta_ref[...]).astype(o_ref.dtype)


# ---------------------------------------------------------------------------
# Shape helpers / parameter preparation (all layout work hoisted to init)
# ---------------------------------------------------------------------------
def in2out_conv2d(h, w, kernel_size, padding=0, dilation=1, stride=1):
    nh = h + 2 * padding - dilation * (kernel_size - 1) - 1
    nw = w + 2 * padding - dilation * (kernel_size - 1) - 1
    return nh // stride + 1, nw // stride + 1


def init_params(key, obs_shape, feature_dim, num_layers=4, num_filters=64):
    """Torch-layout parameters (OIHW conv weights, [Z, flat] fc weight)."""
    C, H, W = obs_shape
    params = {"convs": []}
    in_c = C
    for _ in range(num_layers):
        key, kw_, kb_ = jax.random.split(key, 3)
        fan_in = in_c * 3 * 3
        bound = 1.0 / jnp.sqrt(fan_in)
        w = jax.random.uniform(kw_, (num_filters, in_c, 3, 3), jnp.float32, -bound, bound)
        b = jax.random.uniform(kb_, (num_filters,), jnp.float32, -bound, bound)
        params["convs"].append((w, b))
        in_c = num_filters

    out_h, out_w = in2out_conv2d(H, W, 3, stride=2)
    for _ in range(num_layers - 1):
        out_h, out_w = in2out_conv2d(out_h, out_w, 3, stride=1)
    flat = num_filters * out_h * out_w

    key, kw_, kb_ = jax.random.split(key, 3)
    bound = 1.0 / jnp.sqrt(flat)
    params["fc_w"] = jax.random.uniform(kw_, (feature_dim, flat), jnp.float32, -bound, bound)
    params["fc_b"] = jax.random.uniform(kb_, (feature_dim,), jnp.float32, -bound, bound)
    params["ln_g"] = jnp.ones((feature_dim,), jnp.float32)
    params["ln_b"] = jnp.zeros((feature_dim,), jnp.float32)
    return params


def prepare_params(params, obs_shape):
    """One-time weight re-layout so the forward pass needs zero transposes."""
    C, H, W = obs_shape
    num_layers = len(params["convs"])

    # Conv weights: [O, Cin, kh, kw] -> [(kh, kw, Cin) flattened, O]  (im2col K).
    conv_ws, conv_bs = [], []
    for w, b in params["convs"]:
        o, cin, kh, kw = w.shape
        conv_ws.append(w.transpose(2, 3, 1, 0).reshape(kh * kw * cin, o))
        conv_bs.append(b.reshape(1, o))

    # fc weight: torch flat order is (c, h, w); re-group rows to (h, w, c) so
    # the kernel can consume the NHWC activation flatten directly.
    out_h, out_w = in2out_conv2d(H, W, 3, stride=2)
    for _ in range(num_layers - 1):
        out_h, out_w = in2out_conv2d(out_h, out_w, 3, stride=1)
    Z = params["fc_w"].shape[0]
    nf = params["convs"][-1][0].shape[0]
    fcw = params["fc_w"].reshape(Z, nf, out_h, out_w).transpose(2, 3, 1, 0)
    fcw = fcw.reshape(out_h * out_w * nf, Z)

    return {
        "conv_ws": conv_ws, "conv_bs": conv_bs,
        "fc_w": fcw, "fc_b": params["fc_b"].reshape(1, Z),
        "ln_g": params["ln_g"].reshape(1, Z), "ln_b": params["ln_b"].reshape(1, Z),
    }


# ---------------------------------------------------------------------------
# Fused forward pass
# ---------------------------------------------------------------------------
def forward(prepped, obs, *, tb=None):
    """obs: [B, C, H, W] -> [B, feature_dim] (matches the PyTorch forward)."""
    B, C, H, W = obs.shape
    num_layers = len(prepped["conv_ws"])
    Z = prepped["fc_w"].shape[-1]

    spatial = [in2out_conv2d(H, W, 3, stride=2)]
    for _ in range(num_layers - 1):
        spatial.append(in2out_conv2d(spatial[-1][0], spatial[-1][1], 3, stride=1))
    oh0, ow0 = spatial[0]

    # Layer-0 im2col on the raw obs (tiny one-time XLA op): NCHW -> NHWC
    # stride-2 3x3 patches, channel order (kh, kw, c) matching conv_ws[0].
    x = jnp.transpose(obs, (0, 2, 3, 1)).astype(jnp.float32)
    pats = [x[:, i:i + 2 * (oh0 - 1) + 1:2, j:j + 2 * (ow0 - 1) + 1:2, :]
            for i in range(3) for j in range(3)]
    x0 = jnp.concatenate(pats, axis=-1)                     # [B, oh0, ow0, 9*C]

    # Batch tiling: fold TB samples into the matmul M dim.  Keep >= 2 grid
    # steps so dimension_semantics=("parallel",) shards across both v7x TCs.
    if tb is None:
        tb = 1 if B <= 2 else max(1, min(32, (B + 1) // 2))
    grid = pl.cdiv(B, tb)
    b_pad = grid * tb
    if b_pad != B:
        x0 = jnp.pad(x0, ((0, b_pad - B), (0, 0), (0, 0), (0, 0)))
    x0 = x0.reshape(grid, tb * oh0 * ow0, 9 * C)

    in_specs = [pl.BlockSpec((None, tb * oh0 * ow0, 9 * C), lambda g: (g, 0, 0))]
    inputs = [x0]
    for wl, bl in zip(prepped["conv_ws"], prepped["conv_bs"]):
        in_specs.append(pl.BlockSpec(wl.shape, lambda g: (0, 0)))   # resident weights
        in_specs.append(pl.BlockSpec(bl.shape, lambda g: (0, 0)))
        inputs += [wl, bl]
    for name in ("fc_w", "fc_b", "ln_g", "ln_b"):
        in_specs.append(pl.BlockSpec(prepped[name].shape, lambda g: (0, 0)))
        inputs.append(prepped[name])

    kernel = functools.partial(_encoder_kernel, spatial=tuple(spatial), eps=1e-5,
                               num_layers=num_layers, tb=tb)

    out = pl.pallas_call(
        kernel,
        out_shape=jax.ShapeDtypeStruct((grid, tb, Z), jnp.float32),
        grid_spec=pltpu.PrefetchScalarGridSpec(
            num_scalar_prefetch=0,
            grid=(grid,),
            in_specs=in_specs,
            out_specs=pl.BlockSpec((None, tb, Z), lambda g: (g, 0, 0)),
        ),
        # VMEM footprint is <2 MiB at the default config; raise vmem_limit_bytes
        # and bf16/single-buffer the weight specs only when scaling filters/obs.
        compiler_params=pltpu.CompilerParams(dimension_semantics=("parallel",)),
    )(*inputs)
    return out.reshape(b_pad, Z)[:B]


# ---------------------------------------------------------------------------
# Pure-JAX reference (torch-layout params) for validation
# ---------------------------------------------------------------------------
def forward_reference(params, obs):
    x = obs
    strides = [2] + [1] * (len(params["convs"]) - 1)
    for (w, b), s in zip(params["convs"], strides):
        x = jax.lax.conv_general_dilated(
            x, w, (s, s), "VALID", dimension_numbers=("NCHW", "OIHW", "NCHW"))
        x = jax.nn.relu(x + b.reshape(1, -1, 1, 1))
    h = x.reshape(x.shape[0], -1)
    y = h @ params["fc_w"].T + params["fc_b"]
    mean = y.mean(-1, keepdims=True)
    var = jnp.square(y - mean).mean(-1, keepdims=True)
    return (y - mean) / jnp.sqrt(var + 1e-5) * params["ln_g"] + params["ln_b"]


if __name__ == "__main__":
    B = 2
    obs_shape = (4, 16, 16)   # (C, H, W)
    feature_dim = 32
    num_layers = 4
    num_filters = 64

    key = jax.random.PRNGKey(0)
    key, pkey, okey = jax.random.split(key, 3)
    params = init_params(pkey, obs_shape, feature_dim, num_layers, num_filters)
    prepped = prepare_params(params, obs_shape)
    obs = jax.random.normal(okey, (B,) + obs_shape, jnp.float32)

    out = jax.block_until_ready(forward(prepped, obs))
    ref = jax.block_until_ready(forward_reference(params, obs))

    assert out.shape == (B, feature_dim), out.shape
    err = float(jnp.max(jnp.abs(out - ref)))
    assert jnp.allclose(out, ref, atol=1e-3, rtol=1e-3), err
    print("KERNEL_OK")
</pallas_src>

<mosaic_0001>
module attributes {stable_mosaic.version = 11 : i64} {
  func.func @_encoder_kernel(%arg0: i32, %arg1: memref<1x49x36xf32, #tpu.memory_space<vmem>>, %arg2: memref<36x64xf32, #tpu.memory_space<vmem>>, %arg3: memref<1x64xf32, #tpu.memory_space<vmem>>, %arg4: memref<576x64xf32, #tpu.memory_space<vmem>>, %arg5: memref<1x64xf32, #tpu.memory_space<vmem>>, %arg6: memref<576x64xf32, #tpu.memory_space<vmem>>, %arg7: memref<1x64xf32, #tpu.memory_space<vmem>>, %arg8: memref<576x64xf32, #tpu.memory_space<vmem>>, %arg9: memref<1x64xf32, #tpu.memory_space<vmem>>, %arg10: memref<64x32xf32, #tpu.memory_space<vmem>>, %arg11: memref<1x32xf32, #tpu.memory_space<vmem>>, %arg12: memref<1x32xf32, #tpu.memory_space<vmem>>, %arg13: memref<1x32xf32, #tpu.memory_space<vmem>>, %arg14: memref<1x1x32xf32, #tpu.memory_space<vmem>>) attributes {dimension_semantics = [#tpu.dimension_semantics<parallel>], iteration_bounds = array<i64: 2>, scalar_prefetch = 0 : i64, scratch_operands = 0 : i64, tpu.core_type = #tpu.core_type<tc>, window_params = [{transform_indices = @transform_0, window_bounds = array<i64: 1, 49, 36>}, {pipeline_mode = #tpu.pipeline_mode<synchronous>, transform_indices = @transform_1, window_bounds = array<i64: 36, 64>}, {pipeline_mode = #tpu.pipeline_mode<synchronous>, transform_indices = @transform_2, window_bounds = array<i64: 1, 64>}, {pipeline_mode = #tpu.pipeline_mode<synchronous>, transform_indices = @transform_3, window_bounds = array<i64: 576, 64>}, {pipeline_mode = #tpu.pipeline_mode<synchronous>, transform_indices = @transform_4, window_bounds = array<i64: 1, 64>}, {pipeline_mode = #tpu.pipeline_mode<synchronous>, transform_indices = @transform_5, window_bounds = array<i64: 576, 64>}, {pipeline_mode = #tpu.pipeline_mode<synchronous>, transform_indices = @transform_6, window_bounds = array<i64: 1, 64>}, {pipeline_mode = #tpu.pipeline_mode<synchronous>, transform_indices = @transform_7, window_bounds = array<i64: 576, 64>}, {pipeline_mode = #tpu.pipeline_mode<synchronous>, transform_indices = @transform_8, window_bounds = array<i64: 1, 64>}, {pipeline_mode = #tpu.pipeline_mode<synchronous>, transform_indices = @transform_9, window_bounds = array<i64: 64, 32>}, {pipeline_mode = #tpu.pipeline_mode<synchronous>, transform_indices = @transform_10, window_bounds = array<i64: 1, 32>}, {pipeline_mode = #tpu.pipeline_mode<synchronous>, transform_indices = @transform_11, window_bounds = array<i64: 1, 32>}, {pipeline_mode = #tpu.pipeline_mode<synchronous>, transform_indices = @transform_12, window_bounds = array<i64: 1, 32>}, {transform_indices = @transform_13, window_bounds = array<i64: 1, 1, 32>}]} {
    %c0 = arith.constant 0 : index
    %c0_0 = arith.constant 0 : index
    %c0_1 = arith.constant 0 : index
    %0 = vector.load %arg1[%c0, %c0_0, %c0_1] : memref<1x49x36xf32, #tpu.memory_space<vmem>>, vector<1x49x36xf32>
    %1 = vector.shape_cast %0 : vector<1x49x36xf32> to vector<49x36xf32>
    %c0_2 = arith.constant 0 : index
    %c0_3 = arith.constant 0 : index
    %2 = vector.load %arg2[%c0_2, %c0_3] : memref<36x64xf32, #tpu.memory_space<vmem>>, vector<36x64xf32>
    %cst = arith.constant dense<0.000000e+00> : vector<49x64xf32>
    %3 = tpu.matmul %1, %2, %cst {dimension_numbers = #tpu.dot_dimension_numbers<[1], [0], [0], [1], [0, 0, 1, 1], [], []>} : vector<49x36xf32>, vector<36x64xf32>, vector<49x64xf32> -> vector<49x64xf32>
    %c0_4 = arith.constant 0 : index
    %c0_5 = arith.constant 0 : index
    %4 = vector.load %arg3[%c0_4, %c0_5] : memref<1x64xf32, #tpu.memory_space<vmem>>, vector<1x64xf32>
    %5 = vector.broadcast %4 : vector<1x64xf32> to vector<49x64xf32>
    %6 = arith.addf %3, %5 : vector<49x64xf32>
    %cst_6 = arith.constant 0.000000e+00 : f32
    %7 = vector.broadcast %cst_6 : f32 to vector<49x64xf32>
    %8 = arith.maximumf %6, %7 : vector<49x64xf32>
    %9 = vector.shape_cast %8 : vector<49x64xf32> to vector<1x7x7x64xf32>
    %10 = vector.extract_strided_slice %9 {offsets = [0, 0, 0, 0], sizes = [1, 5, 5, 64], strides = [1, 1, 1, 1]} : vector<1x7x7x64xf32> to vector<1x5x5x64xf32>
    %11 = vector.extract_strided_slice %9 {offsets = [0, 0, 1, 0], sizes = [1, 5, 5, 64], strides = [1, 1, 1, 1]} : vector<1x7x7x64xf32> to vector<1x5x5x64xf32>
    %12 = vector.extract_strided_slice %9 {offsets = [0, 0, 2, 0], sizes = [1, 5, 5, 64], strides = [1, 1, 1, 1]} : vector<1x7x7x64xf32> to vector<1x5x5x64xf32>
    %13 = vector.extract_strided_slice %9 {offsets = [0, 1, 0, 0], sizes = [1, 5, 5, 64], strides = [1, 1, 1, 1]} : vector<1x7x7x64xf32> to vector<1x5x5x64xf32>
    %14 = vector.extract_strided_slice %9 {offsets = [0, 1, 1, 0], sizes = [1, 5, 5, 64], strides = [1, 1, 1, 1]} : vector<1x7x7x64xf32> to vector<1x5x5x64xf32>
    %15 = vector.extract_strided_slice %9 {offsets = [0, 1, 2, 0], sizes = [1, 5, 5, 64], strides = [1, 1, 1, 1]} : vector<1x7x7x64xf32> to vector<1x5x5x64xf32>
    %16 = vector.extract_strided_slice %9 {offsets = [0, 2, 0, 0], sizes = [1, 5, 5, 64], strides = [1, 1, 1, 1]} : vector<1x7x7x64xf32> to vector<1x5x5x64xf32>
    %17 = vector.extract_strided_slice %9 {offsets = [0, 2, 1, 0], sizes = [1, 5, 5, 64], strides = [1, 1, 1, 1]} : vector<1x7x7x64xf32> to vector<1x5x5x64xf32>
    %18 = vector.extract_strided_slice %9 {offsets = [0, 2, 2, 0], sizes = [1, 5, 5, 64], strides = [1, 1, 1, 1]} : vector<1x7x7x64xf32> to vector<1x5x5x64xf32>
    %19 = tpu.concatenate %10, %11, %12, %13, %14, %15, %16, %17, %18 in 3 : vector<1x5x5x64xf32>, vector<1x5x5x64xf32>, vector<1x5x5x64xf32>, vector<1x5x5x64xf32>, vector<1x5x5x64xf32>, vector<1x5x5x64xf32>, vector<1x5x5x64xf32>, vector<1x5x5x64xf32>, vector<1x5x5x64xf32> -> vector<1x5x5x576xf32>
    %20 = vector.shape_cast %19 : vector<1x5x5x576xf32> to vector<25x576xf32>
    %c0_7 = arith.constant 0 : index
    %c0_8 = arith.constant 0 : index
    %21 = vector.load %arg4[%c0_7, %c0_8] : memref<576x64xf32, #tpu.memory_space<vmem>>, vector<576x64xf32>
    %cst_9 = arith.constant dense<0.000000e+00> : vector<25x64xf32>
    %22 = tpu.matmul %20, %21, %cst_9 {dimension_numbers = #tpu.dot_dimension_numbers<[1], [0], [0], [1], [0, 0, 1, 1], [], []>} : vector<25x576xf32>, vector<576x64xf32>, vector<25x64xf32> -> vector<25x64xf32>
    %c0_10 = arith.constant 0 : index
    %c0_11 = arith.constant 0 : index
    %23 = vector.load %arg5[%c0_10, %c0_11] : memref<1x64xf32, #tpu.memory_space<vmem>>, vector<1x64xf32>
    %24 = vector.broadcast %23 : vector<1x64xf32> to vector<25x64xf32>
    %25 = arith.addf %22, %24 : vector<25x64xf32>
    %cst_12 = arith.constant 0.000000e+00 : f32
    %26 = vector.broadcast %cst_12 : f32 to vector<25x64xf32>
    %27 = arith.maximumf %25, %26 : vector<25x64xf32>
    %28 = vector.shape_cast %27 : vector<25x64xf32> to vector<1x5x5x64xf32>
    %29 = vector.extract_strided_slice %28 {offsets = [0, 0, 0, 0], sizes = [1, 3, 3, 64], strides = [1, 1, 1, 1]} : vector<1x5x5x64xf32> to vector<1x3x3x64xf32>
    %30 = vector.extract_strided_slice %28 {offsets = [0, 0, 1, 0], sizes = [1, 3, 3, 64], strides = [1, 1, 1, 1]} : vector<1x5x5x64xf32> to vector<1x3x3x64xf32>
    %31 = vector.extract_strided_slice %28 {offsets = [0, 0, 2, 0], sizes = [1, 3, 3, 64], strides = [1, 1, 1, 1]} : vector<1x5x5x64xf32> to vector<1x3x3x64xf32>
    %32 = vector.extract_strided_slice %28 {offsets = [0, 1, 0, 0], sizes = [1, 3, 3, 64], strides = [1, 1, 1, 1]} : vector<1x5x5x64xf32> to vector<1x3x3x64xf32>
    %33 = vector.extract_strided_slice %28 {offsets = [0, 1, 1, 0], sizes = [1, 3, 3, 64], strides = [1, 1, 1, 1]} : vector<1x5x5x64xf32> to vector<1x3x3x64xf32>
    %34 = vector.extract_strided_slice %28 {offsets = [0, 1, 2, 0], sizes = [1, 3, 3, 64], strides = [1, 1, 1, 1]} : vector<1x5x5x64xf32> to vector<1x3x3x64xf32>
    %35 = vector.extract_strided_slice %28 {offsets = [0, 2, 0, 0], sizes = [1, 3, 3, 64], strides = [1, 1, 1, 1]} : vector<1x5x5x64xf32> to vector<1x3x3x64xf32>
    %36 = vector.extract_strided_slice %28 {offsets = [0, 2, 1, 0], sizes = [1, 3, 3, 64], strides = [1, 1, 1, 1]} : vector<1x5x5x64xf32> to vector<1x3x3x64xf32>
    %37 = vector.extract_strided_slice %28 {offsets = [0, 2, 2, 0], sizes = [1, 3, 3, 64], strides = [1, 1, 1, 1]} : vector<1x5x5x64xf32> to vector<1x3x3x64xf32>
    %38 = tpu.concatenate %29, %30, %31, %32, %33, %34, %35, %36, %37 in 3 : vector<1x3x3x64xf32>, vector<1x3x3x64xf32>, vector<1x3x3x64xf32>, vector<1x3x3x64xf32>, vector<1x3x3x64xf32>, vector<1x3x3x64xf32>, vector<1x3x3x64xf32>, vector<1x3x3x64xf32>, vector<1x3x3x64xf32> -> vector<1x3x3x576xf32>
    %39 = vector.shape_cast %38 : vector<1x3x3x576xf32> to vector<9x576xf32>
    %c0_13 = arith.constant 0 : index
    %c0_14 = arith.constant 0 : index
    %40 = vector.load %arg6[%c0_13, %c0_14] : memref<576x64xf32, #tpu.memory_space<vmem>>, vector<576x64xf32>
    %cst_15 = arith.constant dense<0.000000e+00> : vector<9x64xf32>
    %41 = tpu.matmul %39, %40, %cst_15 {dimension_numbers = #tpu.dot_dimension_numbers<[1], [0], [0], [1], [0, 0, 1, 1], [], []>} : vector<9x576xf32>, vector<576x64xf32>, vector<9x64xf32> -> vector<9x64xf32>
    %c0_16 = arith.constant 0 : index
    %c0_17 = arith.constant 0 : index
    %42 = vector.load %arg7[%c0_16, %c0_17] : memref<1x64xf32, #tpu.memory_space<vmem>>, vector<1x64xf32>
    %43 = vector.broadcast %42 : vector<1x64xf32> to vector<9x64xf32>
    %44 = arith.addf %41, %43 : vector<9x64xf32>
    %cst_18 = arith.constant 0.000000e+00 : f32
    %45 = vector.broadcast %cst_18 : f32 to vector<9x64xf32>
    %46 = arith.maximumf %44, %45 : vector<9x64xf32>
    %47 = vector.shape_cast %46 : vector<9x64xf32> to vector<1x3x3x64xf32>
    %48 = vector.extract_strided_slice %47 {offsets = [0, 0, 0, 0], sizes = [1, 1, 1, 64], strides = [1, 1, 1, 1]} : vector<1x3x3x64xf32> to vector<1x1x1x64xf32>
    %49 = vector.extract_strided_slice %47 {offsets = [0, 0, 1, 0], sizes = [1, 1, 1, 64], strides = [1, 1, 1, 1]} : vector<1x3x3x64xf32> to vector<1x1x1x64xf32>
    %50 = vector.extract_strided_slice %47 {offsets = [0, 0, 2, 0], sizes = [1, 1, 1, 64], strides = [1, 1, 1, 1]} : vector<1x3x3x64xf32> to vector<1x1x1x64xf32>
    %51 = vector.extract_strided_slice %47 {offsets = [0, 1, 0, 0], sizes = [1, 1, 1, 64], strides = [1, 1, 1, 1]} : vector<1x3x3x64xf32> to vector<1x1x1x64xf32>
    %52 = vector.extract_strided_slice %47 {offsets = [0, 1, 1, 0], sizes = [1, 1, 1, 64], strides = [1, 1, 1, 1]} : vector<1x3x3x64xf32> to vector<1x1x1x64xf32>
    %53 = vector.extract_strided_slice %47 {offsets = [0, 1, 2, 0], sizes = [1, 1, 1, 64], strides = [1, 1, 1, 1]} : vector<1x3x3x64xf32> to vector<1x1x1x64xf32>
    %54 = vector.extract_strided_slice %47 {offsets = [0, 2, 0, 0], sizes = [1, 1, 1, 64], strides = [1, 1, 1, 1]} : vector<1x3x3x64xf32> to vector<1x1x1x64xf32>
    %55 = vector.extract_strided_slice %47 {offsets = [0, 2, 1, 0], sizes = [1, 1, 1, 64], strides = [1, 1, 1, 1]} : vector<1x3x3x64xf32> to vector<1x1x1x64xf32>
    %56 = vector.extract_strided_slice %47 {offsets = [0, 2, 2, 0], sizes = [1, 1, 1, 64], strides = [1, 1, 1, 1]} : vector<1x3x3x64xf32> to vector<1x1x1x64xf32>
    %57 = tpu.concatenate %48, %49, %50, %51, %52, %53, %54, %55, %56 in 3 : vector<1x1x1x64xf32>, vector<1x1x1x64xf32>, vector<1x1x1x64xf32>, vector<1x1x1x64xf32>, vector<1x1x1x64xf32>, vector<1x1x1x64xf32>, vector<1x1x1x64xf32>, vector<1x1x1x64xf32>, vector<1x1x1x64xf32> -> vector<1x1x1x576xf32>
    %58 = vector.shape_cast %57 : vector<1x1x1x576xf32> to vector<1x576xf32>
    %c0_19 = arith.constant 0 : index
    %c0_20 = arith.constant 0 : index
    %59 = vector.load %arg8[%c0_19, %c0_20] : memref<576x64xf32, #tpu.memory_space<vmem>>, vector<576x64xf32>
    %cst_21 = arith.constant dense<0.000000e+00> : vector<1x64xf32>
    %60 = tpu.matmul %58, %59, %cst_21 {dimension_numbers = #tpu.dot_dimension_numbers<[1], [0], [0], [1], [0, 0, 1, 1], [], []>} : vector<1x576xf32>, vector<576x64xf32>, vector<1x64xf32> -> vector<1x64xf32>
    %c0_22 = arith.constant 0 : index
    %c0_23 = arith.constant 0 : index
    %61 = vector.load %arg9[%c0_22, %c0_23] : memref<1x64xf32, #tpu.memory_space<vmem>>, vector<1x64xf32>
    %62 = arith.addf %60, %61 : vector<1x64xf32>
    %cst_24 = arith.constant 0.000000e+00 : f32
    %63 = vector.broadcast %cst_24 : f32 to vector<1x64xf32>
    %64 = arith.maximumf %62, %63 : vector<1x64xf32>
    %65 = vector.shape_cast %64 : vector<1x64xf32> to vector<1x1x1x64xf32>
    %66 = vector.shape_cast %65 : vector<1x1x1x64xf32> to vector<1x64xf32>
    %c0_25 = arith.constant 0 : index
    %c0_26 = arith.constant 0 : index
    %67 = vector.load %arg10[%c0_25, %c0_26] : memref<64x32xf32, #tpu.memory_space<vmem>>, vector<64x32xf32>
    %cst_27 = arith.constant dense<0.000000e+00> : vector<1x32xf32>
    %68 = tpu.matmul %66, %67, %cst_27 {dimension_numbers = #tpu.dot_dimension_numbers<[1], [0], [0], [1], [0, 0, 1, 1], [], []>} : vector<1x64xf32>, vector<64x32xf32>, vector<1x32xf32> -> vector<1x32xf32>
    %c0_28 = arith.constant 0 : index
    %c0_29 = arith.constant 0 : index
    %69 = vector.load %arg11[%c0_28, %c0_29] : memref<1x32xf32, #tpu.memory_space<vmem>>, vector<1x32xf32>
    %70 = arith.addf %68, %69 : vector<1x32xf32>
    %cst_30 = arith.constant dense<0.000000e+00> : vector<1xf32>
    %71 = vector.multi_reduction <add>, %70, %cst_30 [1] : vector<1x32xf32> to vector<1xf32>
    %72 = vector.shape_cast %71 : vector<1xf32> to vector<1x1xf32>
    %cst_31 = arith.constant 3.200000e+01 : f32
    %73 = vector.broadcast %cst_31 : f32 to vector<1x1xf32>
    %74 = arith.divf %72, %73 : vector<1x1xf32>
    %75 = vector.broadcast %74 : vector<1x1xf32> to vector<1x32xf32>
    %76 = arith.subf %70, %75 : vector<1x32xf32>
    %77 = arith.mulf %76, %76 : vector<1x32xf32>
    %cst_32 = arith.constant dense<0.000000e+00> : vector<1xf32>
    %78 = vector.multi_reduction <add>, %77, %cst_32 [1] : vector<1x32xf32> to vector<1xf32>
    %79 = vector.shape_cast %78 : vector<1xf32> to vector<1x1xf32>
    %cst_33 = arith.constant 3.200000e+01 : f32
    %80 = vector.broadcast %cst_33 : f32 to vector<1x1xf32>
    %81 = arith.divf %79, %80 : vector<1x1xf32>
    %82 = vector.broadcast %74 : vector<1x1xf32> to vector<1x32xf32>
    %83 = arith.subf %70, %82 : vector<1x32xf32>
    %cst_34 = arith.constant 9.99999974E-6 : f32
    %84 = vector.broadcast %cst_34 : f32 to vector<1x1xf32>
    %85 = arith.addf %81, %84 : vector<1x1xf32>
    %86 = math.rsqrt %85 : vector<1x1xf32>
    %87 = vector.broadcast %86 : vector<1x1xf32> to vector<1x32xf32>
    %88 = arith.mulf %83, %87 : vector<1x32xf32>
    %c0_35 = arith.constant 0 : index
    %c0_36 = arith.constant 0 : index
    %89 = vector.load %arg12[%c0_35, %c0_36] : memref<1x32xf32, #tpu.memory_space<vmem>>, vector<1x32xf32>
    %90 = arith.mulf %88, %89 : vector<1x32xf32>
    %c0_37 = arith.constant 0 : index
    %c0_38 = arith.constant 0 : index
    %91 = vector.load %arg13[%c0_37, %c0_38] : memref<1x32xf32, #tpu.memory_space<vmem>>, vector<1x32xf32>
    %92 = arith.addf %90, %91 : vector<1x32xf32>
    %c0_39 = arith.constant 0 : index
    %c0_40 = arith.constant 0 : index
    %c0_41 = arith.constant 0 : index
    %93 = vector.load %arg14[%c0_39, %c0_40, %c0_41] : memref<1x1x32xf32, #tpu.memory_space<vmem>>, vector<1x1x32xf32>
    %94 = vector.shape_cast %93 : vector<1x1x32xf32> to vector<1x32xf32>
    %95 = vector.shape_cast %92 : vector<1x32xf32> to vector<1x1x32xf32>
    tpu.vector_store %arg14[%c0_39, %c0_40, %c0_41], %95 {strides = array<i32>} : memref<1x1x32xf32, #tpu.memory_space<vmem>>, vector<1x1x32xf32>,
    return
  }
  func.func @transform_0(%arg0: i32) -> (i32, i32, i32) {
    %c0_i32 = arith.constant 0 : i32
    %c0_i32_0 = arith.constant 0 : i32
    %c0_i32_1 = arith.constant 0 : i32
    return %arg0, %c0_i32, %c0_i32_0 : i32, i32, i32
  }
  func.func @transform_1(%arg0: i32) -> (i32, i32) {
    %c0_i32 = arith.constant 0 : i32
    %c0_i32_0 = arith.constant 0 : i32
    %c0_i32_1 = arith.constant 0 : i32
    return %c0_i32, %c0_i32_0 : i32, i32
  }
  func.func @transform_2(%arg0: i32) -> (i32, i32) {
    %c0_i32 = arith.constant 0 : i32
    %c0_i32_0 = arith.constant 0 : i32
    %c0_i32_1 = arith.constant 0 : i32
    return %c0_i32, %c0_i32_0 : i32, i32
  }
  func.func @transform_3(%arg0: i32) -> (i32, i32) {
    %c0_i32 = arith.constant 0 : i32
    %c0_i32_0 = arith.constant 0 : i32
    %c0_i32_1 = arith.constant 0 : i32
    return %c0_i32, %c0_i32_0 : i32, i32
  }
  func.func @transform_4(%arg0: i32) -> (i32, i32) {
    %c0_i32 = arith.constant 0 : i32
    %c0_i32_0 = arith.constant 0 : i32
    %c0_i32_1 = arith.constant 0 : i32
    return %c0_i32, %c0_i32_0 : i32, i32
  }
  func.func @transform_5(%arg0: i32) -> (i32, i32) {
    %c0_i32 = arith.constant 0 : i32
    %c0_i32_0 = arith.constant 0 : i32
    %c0_i32_1 = arith.constant 0 : i32
    return %c0_i32, %c0_i32_0 : i32, i32
  }
  func.func @transform_6(%arg0: i32) -> (i32, i32) {
    %c0_i32 = arith.constant 0 : i32
    %c0_i32_0 = arith.constant 0 : i32
    %c0_i32_1 = arith.constant 0 : i32
    return %c0_i32, %c0_i32_0 : i32, i32
  }
  func.func @transform_7(%arg0: i32) -> (i32, i32) {
    %c0_i32 = arith.constant 0 : i32
    %c0_i32_0 = arith.constant 0 : i32
    %c0_i32_1 = arith.constant 0 : i32
    return %c0_i32, %c0_i32_0 : i32, i32
  }
  func.func @transform_8(%arg0: i32) -> (i32, i32) {
    %c0_i32 = arith.constant 0 : i32
    %c0_i32_0 = arith.constant 0 : i32
    %c0_i32_1 = arith.constant 0 : i32
    return %c0_i32, %c0_i32_0 : i32, i32
  }
  func.func @transform_9(%arg0: i32) -> (i32, i32) {
    %c0_i32 = arith.constant 0 : i32
    %c0_i32_0 = arith.constant 0 : i32
    %c0_i32_1 = arith.constant 0 : i32
    return %c0_i32, %c0_i32_0 : i32, i32
  }
  func.func @transform_10(%arg0: i32) -> (i32, i32) {
    %c0_i32 = arith.constant 0 : i32
    %c0_i32_0 = arith.constant 0 : i32
    %c0_i32_1 = arith.constant 0 : i32
    return %c0_i32, %c0_i32_0 : i32, i32
  }
  func.func @transform_11(%arg0: i32) -> (i32, i32) {
    %c0_i32 = arith.constant 0 : i32
    %c0_i32_0 = arith.constant 0 : i32
    %c0_i32_1 = arith.constant 0 : i32
    return %c0_i32, %c0_i32_0 : i32, i32
  }
  func.func @transform_12(%arg0: i32) -> (i32, i32) {
    %c0_i32 = arith.constant 0 : i32
    %c0_i32_0 = arith.constant 0 : i32
    %c0_i32_1 = arith.constant 0 : i32
    return %c0_i32, %c0_i32_0 : i32, i32
  }
  func.func @transform_13(%arg0: i32) -> (i32, i32, i32) {
    %c0_i32 = arith.constant 0 : i32
    %c0_i32_0 = arith.constant 0 : i32
    %c0_i32_1 = arith.constant 0 : i32
    return %arg0, %c0_i32, %c0_i32_0 : i32, i32, i32
  }
}

</mosaic_0001>

<bundles_post_ra>
// kernel: tpu_custom_call.1
= control target key start
LH: loop header
LB: loop body
LE: loop exit
PB: predicated region body
PF: predicated region fallthrough
CT: control target
= control target key end

     0   :  { %s7500_s0 = inlined_call_operand.vmem [shape: f32[2,49,36], index: 0, kind: input, shape index: {}]   ;;  %s7501_s1 = inlined_call_operand.vmem [shape: f32[36,64], index: 1, kind: input, shape index: {}]   ;;  %s7502_s2 = inlined_call_operand.vmem [shape: f32[1,64], index: 2, kind: input, shape index: {}]   ;;  %s7503_s3 = inlined_call_operand.vmem [shape: f32[576,64], index: 3, kind: input, shape index: {}]   ;;  %s7504_s4 = inlined_call_operand.vmem [shape: f32[1,64], index: 4, kind: input, shape index: {}]   ;;  %s7505_s5 = inlined_call_operand.vmem [shape: f32[576,64], index: 5, kind: input, shape index: {}]   ;;  %s7506_s6 = inlined_call_operand.vmem [shape: f32[1,64], index: 6, kind: input, shape index: {}]   ;;  %s7507_s7 = inlined_call_operand.vmem [shape: f32[576,64], index: 7, kind: input, shape index: {}]   ;;  %s7508_s8 = inlined_call_operand.vmem [shape: f32[1,64], index: 8, kind: input, shape index: {}]   ;;  %s7509_s9 = inlined_call_operand.vmem [shape: f32[64,32], index: 9, kind: input, shape index: {}]   ;;  %s7510_s10 = inlined_call_operand.vmem [shape: f32[1,32], index: 10, kind: input, shape index: {}]   ;;  %s7511_s11 = inlined_call_operand.vmem [shape: f32[1,32], index: 11, kind: input, shape index: {}]   ;;  %s7512_s12 = inlined_call_operand.vmem [shape: f32[1,32], index: 12, kind: input, shape index: {}]   ;;  %s7513_s13 = inlined_call_operand.hbm [shape: f32[2,1,32], index: 13, kind: output, shape index: {}]  }
   0x1   :  { %7516 = sst [smem:[#allocation5_spill]] %s7500_s0 }
   0x2   :  { %7517 = sst [smem:[#allocation6_spill]] %s7501_s1 }
   0x3   :  { %7518 = sst [smem:[#allocation7_spill]] %s7502_s2 }
   0x4   :  { %7519 = sst [smem:[#allocation8_spill]] %s7503_s3 }
   0x5   :  { %18 = vsyncpa [#allocation3], 0 }
   0x6   :  { %20 = vsyncpa [#allocation3 + $0x1], 0  ;;  %s5644_s25 = smov 0   ;;  %s5646_s26 = smov 0  }
   0x7   :  { %s5648_s27 = smov 0   ;;  %s5650_s28 = smov 0  }
   0x8 LB: > { %s5665_s29 = sadd.s32 4294967295, %s5566_s28   ;;  %s4718_s30 = sadd.s32 4294967294, %s5566_s28   ;;  %s5566_s28 = sphi %s5650_s28, %s7530_s28   ;;  %s5562_s27 = sphi %s5648_s27, %s7529_s27   ;;  %s5558_s26 = sphi %s5646_s26, %s7528_s26   ;;  %s5554_s25 = sphi %s5644_s25, %s7527_s25  }
   0x9   : > { %s5669_s14 = sadd.s32 1, %s5566_s28   ;;  %s311_s15 = sadd.s32 1, %s5562_s27 }
   0xa   : > { %s308_s16 = ssub.s32 %s5566_s28, %s5669_s14  ;;  %p321_p0 = scmp.ne.s32.totalorder %s5562_s27, %s5558_s26 }
   0xb   : > { %p309_p1 = scmp.eq.s32.totalorder %s308_s16, 0  ;;  %p322_p2 = scmp.eq.s32.totalorder %s5665_s29, 1 }
   0xc   : > { %p327_p3 = scmp.ne.s32.totalorder %s5558_s26, %s5554_s25  ;;  %p328_p4 = scmp.eq.s32.totalorder %s4718_s30, 1 }
   0xd   : > { %s5680_s17 = scalar_select %p309_p1, %s5562_s27, %s311_s15  }
   0xe   : > { %p5682_p5 = por %p322_p2, %p321_p0  ;;  %p5686_p6 = por %p328_p4, %p327_p3 }
   0xf   : > { %p4721_p7 = scmp.ge.s32.totalorder %s5566_s28, 1  ;;  %p390_p8 = scmp.lt.s32.totalorder %s5566_s28, 3 }
  0x11   : > { %p391_p9 = pnand %p4721_p7, %p390_p8 }
  0x12   : > { %s7522_s1 = sld [smem:[#allocation6_spill]] (!%p391_p9)  ;;  %v5568_v3 = vmov (!%p391_p9), 0.0|0.0   ;;  %p433_p10 = scmp.lt.s32.totalorder (!%p391_p9), %s5665_s29, 1  ;;  %vm5569_vm0 = vmmov (!%p391_p9), 0   ;;  %v5570_v6 = vmov (!%p391_p9), 0.0   ;;  %vm479_vm1 = vcmask (!%p391_p9), 1043456  }
  0x13   : > { %394 = sbr.rel (%p391_p9) target bundleno = 1986 (0x7c2), region = 72  ;;  %5193 = vmatprep.subr.bf16.mxu0 (!%p391_p9), %v5568_v3  ;;  %5093 = vmatprep.mubr.msk.f32.mxu0 (!%p391_p9), %vm5569_vm0, %v5570_v6  ;;  %s7523_s0 = sld [smem:[#allocation5_spill]] (!%p391_p9)  ;;  %vm457_vm2 = vcmask (!%p391_p9), 293888   ;;  %v5571_v16 = vmov (!%p391_p9), 1966171168   ;;  %v601_v18 = vlaneseq (!%p391_p9)  ;;  %vm1736_vm3 = vcmask (!%p391_p9), 523264  }
  0x14   : > { %v599_v17 = vunpack.c.l.s4 (!%p391_p9), %v5571_v16  ;;  %s7524_s2 = sld [smem:[#allocation7_spill]] (!%p391_p9)  ;;  %s7525_s3 = sld [smem:[#allocation8_spill]] (!%p391_p9)  ;;  %vm4630_vm4 = vcmask (!%p391_p9), 253952  }
  0x15   : > { %v602_v20 = vshrl.u32 (!%p391_p9), %v601_v18, 7  ;;  %s7526_s15 = smov (!%p391_p9), 64  }
  0x16   : > { %v600_v19 = vunpack.c.0.s8 (!%p391_p9), %v599_v17 }
  0x18   : > { %v445_v0 = vld [vmem:[%s7522_s1] sm:$0xff] (!%p391_p9)  ;;  %v446_v1 = vld [vmem:[%s7522_s1 + $0x8] sm:$0xff] (!%p391_p9)  ;;  %v447_v2 = vld [vmem:[%s7522_s1 + $0x10] sm:$0xff] (!%p391_p9)  ;;  %v5742_v24 = vsub.s32 (!%p391_p9), %v600_v19, %v602_v20 }
  0x19   : > { %v5194_v4 = vpack.c.bf16 (!%p391_p9), %v446_v1, %v445_v0  ;;  %v448_v5 = vld [vmem:[%s7522_s1 + $0x18] sm:$0xff] (!%p391_p9)  ;;  %v449_v8 = vld [vmem:[%s7522_s1 + $0x20] sm:$0xf] (!%p391_p9) }
  0x1a   : > { %v5197_v7 = vpack.c.bf16 %v448_v5, %v447_v2  ;;  %s434_s20 = scalar_select %p433_p10, %s5665_s29, 1  ;;  %v5739_v21 = vld [vmem:[%s7524_s2] ss:$0 sm:$0xff] }
  0x1b   : > { %5195 = vmatpush3.bf16.msra.mxu0 %v5194_v4 }
  0x1c   : > { %5196 = vmatprep.subr.bf16.mxu0 %v5568_v3  ;;  %s5447_s21 = smul.u32 56, %s434_s20  ;;  %s4794_s20 = sshll.u32 %s5665_s29, 4 }
  0x1d   : > { %s7457_s30 = scalar_lea.hbm %s7513_s13, %s4794_s20  ;;  %s5573_s29 = smov [#allocation2]  }
  0x1e   : > { %s437_s24 = scalar_lea.vmem %s7523_s0, %s5447_s21  ;;  %s7514_s21 = smov 64  }
  0x1f   : > { %5198 = vmatpush3.bf16.msra.mxu0 %v5197_v7  ;;  %v438_v9 = vld [vmem:[%s437_s24] sm:$0xff]  ;;  %v439_v10 = vld [vmem:[%s437_s24 + $0x8] sm:$0xff]  ;;  %v440_v11 = vld [vmem:[%s437_s24 + $0x10] sm:$0xff]  ;;  %s5508_s1 = sshll.u32 %s5573_s29, 4  ;;  %s5509_s1 = int_to_ptr.vmem [resolvable:$false] %s5508_s1 }
  0x20   : > { %5091 = vmatprep.subr.mxu0 %v5570_v6  ;;  %v441_v12 = vld [vmem:[%s437_s24 + $0x18] sm:$0xff]  ;;  %v442_v13 = vld [vmem:[%s437_s24 + $0x20] sm:$0xff]  ;;  %v443_v14 = vld [vmem:[%s437_s24 + $0x28] sm:$0xff]  ;;  %s5510_s2 = scalar_lea.vmem %s5509_s1, 32 }
  0x21   : > { %v444_v15 = vld [vmem:[%s437_s24 + $0x30] sm:$0x1] }
  0x23   : > { %5092 = vmatpush3.msk.msra.mxu0 %vm479_vm1, %v449_v8 }
  0x24   : > { %5094 = vmatmul.mubr.msk.f32.vlgmr.msra.gmra.mrb[0].mxu0 %vm457_vm2, %v438_v9 }
  0x25   : > { %5096 = vmatprep.mubr.msk.f32.mxu0 %vm5569_vm0, %v5570_v6 }
  0x28   : > { %5097 = vmatmul.mubr.msk.f32.gmra.mrb[2].mxu0 %vm457_vm2, %v439_v10 }
  0x29   : > { %5099 = vmatprep.mubr.msk.f32.mxu0 %vm5569_vm0, %v5570_v6 }
  0x2c   : > { %5100 = vmatmul.mubr.msk.f32.gmra.mrb[4].mxu0 %vm457_vm2, %v440_v11 }
  0x2d   : > { %5102 = vmatprep.mubr.msk.f32.mxu0 %vm5569_vm0, %v5570_v6 }
  0x30   : > { %5103 = vmatmul.mubr.msk.f32.gmra.mrb[6].mxu0 %vm457_vm2, %v441_v12 }
  0x31   : > { %5105 = vmatprep.mubr.msk.f32.mxu0 %vm5569_vm0, %v5570_v6 }
  0x34   : > { %5106 = vmatmul.mubr.msk.f32.gmra.mrb[8].mxu0 %vm457_vm2, %v442_v13 }
  0x35   : > { %5108 = vmatprep.mubr.msk.f32.mxu0 %vm5569_vm0, %v5570_v6 }
  0x38   : > { %5109 = vmatmul.mubr.msk.f32.gmra.mrb[10].mxu0 %vm457_vm2, %v443_v14 }
  0x39   : > { %5111 = vmatprep.mubr.msk.f32.mxu0 %vm5569_vm0, %v5570_v6 }
  0x3c   : > { %5112 = vmatmul.mubr.msk.f32.gmra.mrb[12].mxu0 %vm457_vm2, %v444_v15 }
  0xf7   : > { %v549_v22 = vpop.f32.mrb[0].mxu0 }
  0xf8   : > { %v550_v23 = vadd.f32 %v5739_v21, %v549_v22  ;;  %v5095_v25 = vpop.f32.mrb[1].mxu0 }
  0xfa   : > { %v583_v26 = vmax.f32 %v550_v23, 0.0 }
  0xfb   : > { %v554_v27 = vpop.f32.mrb[2].mxu0 }
  0xfc   : > { %v597_v28 = vcombine.high %v583_v26, %v583_v26  ;;  %v604_v29 = vrot.slane %v583_v26, %v5742_v24  ;;  %v555_v30 = vadd.f32 %v5739_v21, %v554_v27  ;;  %v5098_v31 = vpop.f32.mrb[3].mxu0 }
  0xfe   : > { %v612_v32 = vcombine.high %v604_v29, %v604_v29  ;;  %v584_v33 = vmax.f32 %v555_v30, 0.0  ;;  %v611_v34 = vrot.slane %v597_v28, %v5742_v24  ;;  %v5748_v36 = vrot.slane %v604_v29, %v5742_v24 }
  0xff   : > { %v559_v35 = vpop.f32.mrb[4].mxu0 }
 0x100   : > { %v5751_v37 = vrot.slane %v612_v32, %v5742_v24  ;;  %v5101_v38 = vpop.f32.mrb[5].mxu0  ;;  %v646_v39 = vcombine.high %v584_v33, %v584_v33  ;;  %v653_v40 = vrot.slane %v584_v33, %v5742_v24  ;;  %v560_v41 = vadd.f32 %v5739_v21, %v559_v35 }
 0x101   : > { %v613_v44 = vcombine.high %v611_v34, %v611_v34  ;;  %v5764_v53 = vrot.slane %v611_v34, %v5742_v24  ;;  %v642_v58 = vcombine.high %v5748_v36, %v5748_v36 }
 0x102   : > { %v905_v42 = vcombine.low %v5748_v36, %v5751_v37  ;;  %v4732_v43 = vcombine.high %v5748_v36, %v5751_v37  ;;  %v660_v45 = vrot.slane %v646_v39, %v5742_v24  ;;  %v585_v46 = vmax.f32 %v560_v41, 0.0 }
 0x103   : > { %v564_v47 = vpop.f32.mrb[6].mxu0  ;;  %v661_v49 = vcombine.high %v653_v40, %v653_v40  ;;  %v644_v52 = vcombine.high %v5751_v37, %v5751_v37  ;;  %v5767_v54 = vrot.slane %v613_v44, %v5742_v24  ;;  %v5775_v63 = vrot.slane %v653_v40, %v5742_v24 }
 0x104   : > { %v5104_v48 = vpop.f32.mrb[7].mxu0  ;;  %v695_v50 = vcombine.high %v585_v46, %v585_v46  ;;  %v565_v51 = vadd.f32 %v5739_v21, %v564_v47  ;;  %v662_v55 = vcombine.high %v660_v45, %v660_v45  ;;  %v702_v59 = vrot.slane %v585_v46, %v5742_v24 }
 0x105   : > { %v5778_v0 = vrot.slane %v661_v49, %v5742_v24  ;;  %v1106_v7 = vcombine.low %v644_v52, %v5764_v53  ;;  %v645_v8 = vcombine.high %v5767_v54, %v5767_v54  ;;  %v5785_v9 = vrot.slane %v660_v45, %v5742_v24 }
 0x106   : > { %v709_v56 = vrot.slane %v695_v50, %v5742_v24  ;;  %v586_v60 = vmax.f32 %v565_v51, 0.0  ;;  %v5788_v10 = vrot.slane %v662_v55, %v5742_v24  ;;  %v710_v13 = vcombine.high %v702_v59, %v702_v59 }
 0x107   : > { %v569_v57 = vpop.f32.mrb[8].mxu0  ;;  %v1105_v16 = vcombine.low %v5751_v37, %v642_v58  ;;  %v1127_v22 = vrot.slane %v5767_v54, %v5742_v24  ;;  %v1120_v26 = vrot.slane %v1106_v7, %v5742_v24  ;;  %v1144_v27 = vcombine.low %v5775_v63, %v5778_v0 }
 0x108   : > { %v570_v61 = vadd.f32 %v5739_v21, %v569_v57  ;;  %v5107_v62 = vpop.f32.mrb[9].mxu0  ;;  %v711_v1 = vcombine.high %v709_v56, %v709_v56  ;;  %v744_v2 = vcombine.high %v586_v60, %v586_v60  ;;  %v751_v4 = vrot.slane %v586_v60, %v5742_v24 }
 0x109   : > { %v5794_v14 = vrot.slane %v709_v56, %v5742_v24  ;;  %v694_v28 = vcombine.high %v5788_v10, %v5788_v10  ;;  %v5812_v29 = vrot.slane %v702_v59, %v5742_v24  ;;  %v4733_v33 = vcombine.high %v5785_v9, %v5788_v10 }
 0x10a   : > { %v587_v5 = vmax.f32 %v570_v61, 0.0  ;;  %v5791_v11 = vrot.slane %v711_v1, %v5742_v24  ;;  %v5800_v19 = vrot.slane %v751_v4, %v5742_v24  ;;  %v758_v23 = vrot.slane %v744_v2, %v5742_v24 }
 0x10b   : > { %v574_v12 = vpop.f32.mrb[10].mxu0  ;;  %v759_v25 = vcombine.high %v751_v4, %v751_v4  ;;  %v5825_v34 = vrot.slane %v710_v13, %v5742_v24  ;;  %v741_v35 = vcombine.high %v5794_v14, %v5794_v14  ;;  %v1113_v38 = vrot.slane %v1105_v16, %v5742_v24 }
 0x10c   : > { %v793_v15 = vcombine.high %v587_v5, %v587_v5  ;;  %v5110_v17 = vpop.f32.mrb[11].mxu0  ;;  %v743_v18 = vcombine.high %v5791_v11, %v5791_v11  ;;  %v575_v20 = vadd.f32 %v5739_v21, %v574_v12  ;;  %v4736_v40 = vcombine.high %v5794_v14, %v5791_v11 }
 0x10d   : > { %v5833_v41 = vrot.slane %v587_v5, %v5742_v24  ;;  %v760_v46 = vcombine.high %v758_v23, %v758_v23  ;;  %v5838_v47 = vrot.slane %v758_v23, %v5742_v24  ;;  %v5841_v48 = vrot.slane %v759_v25, %v5742_v24 }
 0x10e   : > { %v5815_v30 = vcombine.low %v743_v18, %v5800_v19  ;;  %v5818_v31 = vrot.slane %v793_v15, %v5742_v24  ;;  %v588_v45 = vmax.f32 %v575_v20, 0.0  ;;  %v1128_v49 = vcombine.low %v1113_v38, %v1120_v26 }
 0x10f   : > { %v5820_v32 = vpop.f32.mrb[12].mxu0  ;;  %v5845_v50 = vcombine.high %v5800_v19, %v5800_v19  ;;  %v1142_v55 = vrot.slane %v1127_v22, %v5742_v24  ;;  %v4735_v58 = vcombine.high %v5775_v63, %v5778_v0  ;;  %v1152_v59 = vrot.slane %v1144_v27, %v5742_v24 }
 0x110   : > { %v5113_v39 = vpop.f32.mrb[13].mxu0  ;;  %v809_v44 = vcombine.high %v5818_v31, %v5818_v31  ;;  %v842_v52 = vcombine.high %v588_v45, %v588_v45  ;;  %v849_v56 = vrot.slane %v588_v45, %v5742_v24  ;;  %v1135_v57 = vrot.slane %v1128_v49, %v5742_v24 }
 0x111   : > { %v1166_v62 = vrot.slane %v5785_v9, %v5742_v24  ;;  %v691_v1 = vcombine.high %v5775_v63, %v5775_v63  ;;  %v1159_v7 = vrot.slane %v4735_v58, %v5742_v24  ;;  %v5870_v12 = vrot.slane %v760_v46, %v5742_v24 }
 0x112   : > { %v5848_v51 = vrot.slane %v809_v44, %v5742_v24  ;;  %v856_v61 = vrot.slane %v842_v52, %v5742_v24  ;;  %v857_v2 = vcombine.high %v849_v56, %v849_v56  ;;  %v5866_v4 = vrot.slane %v849_v56, %v5742_v24 }
 0x113   : > { %v1143_v5 = vcombine.low %v1135_v57, %v1142_v55  ;;  %v693_v16 = vcombine.high %v5778_v0, %v5778_v0  ;;  %v1167_v20 = vcombine.low %v1152_v59, %v1159_v7  ;;  %v945_v22 = vcombine.low %v5778_v0, %v691_v1 }
 0x114   : > { %v5858_v60 = vcombine.high %v5848_v51, %v5848_v51  ;;  %v858_v13 = vcombine.high %v856_v61, %v856_v61  ;;  %v5873_v15 = vrot.slane %v856_v61, %v5742_v24  ;;  %v5878_v17 = vrot.slane %v857_v2, %v5742_v24 }
 0x115   : > { %1300 = vrot.lane.b32.xlu0 %v1143_v5, %s7514_s21  ;;  %v1181_v25 = vrot.slane %v1166_v62, %v5742_v24  ;;  %v1346_v26 = vcombine.low %v693_v16, %v5785_v9  ;;  %v944_v27 = vcombine.low %v645_v8, %v5775_v63  ;;  %v1174_v39 = vrot.slane %v1167_v20, %v5742_v24 }
 0x116   : > { %v1573_v18 = vcombine.low %v5858_v60, %v5866_v4  ;;  %v5885_v23 = vrot.slane %v858_v13, %v5742_v24  ;;  %v4739_v38 = vcombine.high %v5866_v4, %v5878_v17  ;;  %v959_v44 = vrot.slane %v945_v22, %v5742_v24 }
 0x117   : > { %v1360_v0 = vrot.slane %v5788_v10, %v5742_v24  ;;  %v808_v45 = vcombine.high %v5833_v41, %v5833_v41  ;;  %v1353_v63 = vrot.slane %v1346_v26, %v5742_v24  ;;  %v1223_v8 = vcombine.low %v5800_v19, %v5841_v48 }
 0x118   : > { %v1620_v9 = vcombine.low %v5873_v15, %v5885_v23  ;;  %v4740_v46 = vcombine.high %v5873_v15, %v5885_v23  ;;  %v5908_v49 = vcombine.low %v1174_v39, %v1181_v25  ;;  %v952_v52 = vrot.slane %v944_v27, %v5742_v24 }
 0x119   : > { %v966_v55 = vrot.slane %v693_v16, %v5742_v24  ;;  %v1061_v56 = vcombine.low %v5838_v47, %v5870_v12  ;;  %v1361_v57 = vcombine.low %v959_v44, %v1353_v63  ;;  %v740_v58 = vcombine.high %v5812_v29, %v5812_v29 }
 0x11a   : > { %v984_v59 = vcombine.low %v5812_v29, %v5825_v34  ;;  %1302 = vrot.lane.b32.xlu0 %v5908_v49, %s7514_s21  ;;  %v1375_v19 = vrot.slane %v1360_v0, %v5742_v24  ;;  %v967_v61 = vcombine.low %v952_v52, %v959_v44  ;;  %v991_v62 = vrot.slane %v4733_v33, %v5742_v24 }
 0x11b   : > { %v4737_v1 = vcombine.high %v5812_v29, %v5825_v34  ;;  %v1368_v2 = vrot.slane %v1361_v57, %v5742_v24  ;;  %v981_v5 = vrot.slane %v966_v55, %v5742_v24  ;;  %v1005_v13 = vrot.slane %v740_v58, %v5742_v24 }
 0x11c   : > { %v998_v7 = vrot.slane %v984_v59, %v5742_v24  ;;  %v974_v16 = vrot.slane %v967_v61, %v5742_v24  ;;  %v1230_v33 = vrot.slane %v4736_v40, %v5742_v24  ;;  %v1237_v22 = vrot.slane %v1223_v8, %v5742_v24 }
 0x11d   : > { %v1384_v20 = vrot.slane %v4737_v1, %v5742_v24  ;;  %v4734_v25 = vcombine.high %v5838_v47, %v5870_v12  ;;  %v5937_v26 = vcombine.low %v1368_v2, %v1375_v19  ;;  %v1244_v39 = vrot.slane %v5845_v50, %v5742_v24 }
 0x11e   : > { %v1006_v27 = vcombine.low %v991_v62, %v998_v7  ;;  %v5941_v44 = vcombine.low %v974_v16, %v981_v5  ;;  %v1391_v0 = vrot.slane %v5794_v14, %v5742_v24  ;;  %v1245_v52 = vcombine.low %v1230_v33, %v1237_v22 }
 0x11f   : > { %v1392_v63 = vcombine.low %v998_v7, %v1384_v20  ;;  %1604 = vrot.lane.b32.xlu1 %v5937_v26, %s7514_s21  ;;  %v1020_v8 = vrot.slane %v1005_v13, %v5742_v24  ;;  %v580_v55 = vadd.f32 %v5739_v21, %v5820_v32  ;;  %v5952_v57 = vrot.slane %v1620_v9, %v5742_v24 }
 0x120   : > { %v1013_v40 = vrot.slane %v1006_v27, %v5742_v24  ;;  %1514 = vrot.lane.b32.xlu0 %v5941_v44, %s7514_s21  ;;  %v1252_v19 = vrot.slane %v1245_v52, %v5742_v24  ;;  %v1259_v61 = vrot.slane %v1244_v39, %v5742_v24  ;;  %v1712_v62 = vrot.slane %v4740_v46, %v5742_v24 }
 0x121   : > { %v1399_v59 = vrot.slane %v1392_v63, %v5742_v24  ;;  %v589_v2 = vmax.f32 %v580_v55, 0.0  ;;  %v742_v21 = vcombine.high %v5825_v34, %v5825_v34  ;;  %v1183_v32 = vcombine.low %v694_v28, %v5812_v29 }
 0x122   : > { %v5960_v1 = vcombine.low %v1013_v40, %v1020_v8  ;;  %v816_v9 = vrot.slane %v5833_v41, %v5742_v24  ;;  %v5971_v5 = vrot.slane %v1391_v0, %v5742_v24  ;;  %v5973_v7 = vcombine.low %v1252_v19, %v1259_v61 }
 0x123   : > { %v1720_v46 = vcombine.low %v5952_v57, %v1712_v62  ;;  %v897_v13 = vrot.slane %v589_v2, %v5742_v24  ;;  %v1184_v16 = vcombine.low %v5825_v34, %v740_v58  ;;  %v1191_v10 = vrot.slane %v1183_v32, %v5742_v24 }
 0x124   : > { %1516 = vrot.lane.b32.xlu1 %v5960_v1, %s7514_s21  ;;  %v1205_v28 = vrot.slane %v742_v21, %v5742_v24  ;;  %v790_v29 = vcombine.high %v5838_v47, %v5838_v47  ;;  %v830_v41 = vrot.slane %v808_v45, %v5742_v24  ;;  %1306 = vrot.lane.b32.xlu0 %v5973_v7, %s7514_s21 }
 0x125   : > { %v1069_v20 = vrot.slane %v1061_v56, %v5742_v24  ;;  %v1076_v33 = vrot.slane %v4734_v25, %v5742_v24  ;;  %v5990_v22 = vcombine.low %v1399_v59, %v5971_v5  ;;  %v904_v34 = vrot.slane %v897_v13, %v5742_v24 }
 0x126   : > { %v1198_v58 = vrot.slane %v1184_v16, %v5742_v24  ;;  %v1083_v27 = vrot.slane %v816_v9, %v5742_v24  ;;  %v5996_v47 = vrot.slane %v1720_v46, %v5742_v24  ;;  %v1220_v45 = vrot.slane %v1205_v28, %v5742_v24 }
 0x127   : > { %v1084_v39 = vcombine.low %v1069_v20, %v1076_v33  ;;  %v1022_v56 = vcombine.low %v5791_v11, %v741_v35  ;;  %v1719_v25 = vrot.slane %v904_v34, %v5742_v24  ;;  %v1037_v52 = vrot.slane %v5815_v30, %v5742_v24 }
 0x128   : > { %1606 = vrot.lane.b32.xlu1 %v5990_v22, %s7514_s21  ;;  %v1206_v0 = vcombine.low %v1191_v10, %v1198_v58  ;;  %v1098_v63 = vrot.slane %v1083_v27, %v5742_v24  ;;  %v1408_v40 = vcombine.low %v5841_v48, %v5845_v50  ;;  %v1044_v11 = vrot.slane %v5841_v48, %v5742_v24 }
 0x129   : > { %v1091_v8 = vrot.slane %v1084_v39, %v5742_v24  ;;  %v1030_v14 = vrot.slane %v1022_v56, %v5742_v24  ;;  %v6016_v35 = vrot.slane %v1719_v25, %v5742_v24  ;;  %v792_v59 = vcombine.high %v5870_v12, %v5870_v12 }
 0x12a   : > { %v1213_v55 = vrot.slane %v1206_v0, %v5742_v24  ;;  %v1261_v30 = vcombine.low %v5870_v12, %v790_v29  ;;  %v823_v50 = vrot.slane %v5818_v31, %v5742_v24  ;;  %v1439_v62 = vcombine.low %v816_v9, %v830_v41 }
 0x12b   : > { %v6024_v19 = vcombine.low %v1091_v8, %v1098_v63  ;;  %v1045_v61 = vcombine.low %v1030_v14, %v1037_v52  ;;  %v1735_v2 = vcombine.low %v5996_v47, %v6016_v35  ;;  %v1059_v32 = vrot.slane %v1044_v11, %v5742_v24 }
 0x12c   : > { %v6028_v21 = vcombine.low %v1213_v55, %v1220_v45  ;;  %v1262_v12 = vcombine.low %v792_v59, %v816_v9  ;;  %v1269_v13 = vrot.slane %v1261_v30, %v5742_v24  ;;  %v1283_v31 = vrot.slane %v830_v41, %v5742_v24 }
 0x12d   : > { %1520 = vrot.lane.b32.xlu0 %v6024_v19, %s7514_s21  ;;  %v1052_v46 = vrot.slane %v1045_v61, %v5742_v24  ;;  %v840_v16 = vcombine.high %v830_v41, %v830_v41  ;;  %v791_v10 = vcombine.high %v5841_v48, %v5841_v48  ;;  %v1415_v28 = vrot.slane %v1408_v40, %v5742_v24 }
 0x12e   : > { %1304 = vrot.lane.b32.xlu1 %v6028_v21, %s7514_s21  ;;  %v1276_v20 = vrot.slane %v1262_v12, %v5742_v24  ;;  %v838_v34 = vcombine.high %v816_v9, %v816_v9  ;;  %v1298_v58 = vrot.slane %v1283_v31, %v5742_v24  ;;  %v1446_v41 = vrot.slane %v1439_v62, %v5742_v24 }
 0x12f   : > { %v6041_v29 = vcombine.low %v1052_v46, %v1059_v32  ;;  %v1422_v27 = vrot.slane %v791_v10, %v5742_v24  ;;  %v1423_v45 = vcombine.low %v1037_v52, %v1415_v28  ;;  %v839_v25 = vcombine.high %v823_v50, %v823_v50 }
 0x130   : > { %v1284_v39 = vcombine.low %v1269_v13, %v1276_v20  ;;  %v1453_v56 = vrot.slane %v838_v34, %v5742_v24  ;;  %v1475_v9 = vcombine.low %v840_v16, %v823_v50  ;;  %v1454_v40 = vcombine.low %v1076_v33, %v1446_v41 }
 0x131   : > { %v1430_v48 = vrot.slane %v1423_v45, %v5742_v24  ;;  %v6052_v0 = vrot.slane %v1422_v27, %v5742_v24  ;;  %v1476_v8 = vcombine.low %v5848_v51, %v839_v25  ;;  %v1497_v61 = vrot.slane %v5858_v60, %v5742_v24 }
 0x132   : > { %1518 = vrot.lane.b32.xlu1 %v6041_v29, %s7514_s21  ;;  %v1291_v63 = vrot.slane %v1284_v39, %v5742_v24  ;;  %v1468_v52 = vrot.slane %v1453_v56, %v5742_v24  ;;  %v1483_v11 = vrot.slane %v1475_v9, %v5742_v24  ;;  %v1461_v59 = vrot.slane %v1454_v40, %v5742_v24  ;;  %v2309_v40 = vld [vmem:[%s7525_s3 + $0x180] sm:$0xff] }
 0x133   : > { %v6058_v14 = vcombine.low %v1430_v48, %v6052_v0  ;;  %v1490_v30 = vrot.slane %v1476_v8, %v5742_v24  ;;  %v1529_v33 = vcombine.low %v823_v50, %v5848_v51  ;;  %v4738_v46 = vcombine.high %v823_v50, %v5848_v51 }
 0x134   : > { %v6061_v55 = vcombine.low %v1291_v63, %v1298_v58  ;;  %v6072_v62 = vcombine.low %v1461_v59, %v1468_v52  ;;  %v889_v13 = vcombine.high %v5878_v17, %v5878_v17  ;;  %v1512_v16 = vrot.slane %v1497_v61, %v5742_v24  ;;  %v2278_v63 = vld [vmem:[%s7525_s3 + $0x88] sm:$0xff]  ;;  %v2261_v59 = vld [vmem:[%s7525_s3] sm:$0xff] }
 0x135   : > { %v1498_v32 = vcombine.low %v1483_v11, %v1490_v30  ;;  %v1537_v12 = vrot.slane %v1529_v33, %v5742_v24  ;;  %v1544_v10 = vrot.slane %v4738_v46, %v5742_v24  ;;  %v4743_v28 = vcombine.low %v1468_v52, %v1468_v52  ;;  %v2310_v11 = vld [vmem:[%s7525_s3 + $0x188] sm:$0xff] }
 0x136   : > { %1608 = vrot.lane.b32.xlu1 %v6058_v14, %s7514_s21  ;;  %1308 = vrot.lane.b32.xlu0 %v6061_v55, %s7514_s21  ;;  %v1551_v20 = vrot.slane %v5866_v4, %v5742_v24  ;;  %v1580_v51 = vrot.slane %v1573_v18, %v5742_v24  ;;  %v6091_v50 = vrot.slane %v905_v42, %v5742_v24  ;;  %v2318_v4 = vld [vmem:[%s7525_s3 + $0x1c8] sm:$0xff] }
 0x137   : > { %v1505_v31 = vrot.slane %v1498_v32, %v5742_v24  ;;  %v6097_v34 = vrot.slane %v4732_v43, %v5742_v24  ;;  %v1552_v58 = vcombine.low %v1537_v12, %v1544_v10  ;;  %v1587_v60 = vrot.slane %v5878_v17, %v5742_v24 }
 0x138   : > { %v1566_v27 = vrot.slane %v1551_v20, %v5742_v24  ;;  %v1588_v18 = vcombine.low %v1490_v30, %v1580_v51  ;;  %v6106_v42 = vcombine.high %v5873_v15, %v5873_v15  ;;  %v890_v37 = vcombine.high %v5885_v23, %v5885_v23  ;;  %v2262_v30 = vld [vmem:[%s7525_s3 + $0x8] sm:$0xff] }
 0x139   : > { %v6108_v45 = vcombine.low %v1505_v31, %v1512_v16  ;;  %v1559_v36 = vrot.slane %v1552_v58, %v5742_v24  ;;  %v1660_v43 = vcombine.low %v889_v13, %v5873_v15  ;;  %v2013_v39 = vrot.slane %v4743_v28, %v5742_v24  ;;  %v2277_v15 = vld [vmem:[%s7525_s3 + $0x80] sm:$0xff]  ;;  %v2294_v31 = vld [vmem:[%s7525_s3 + $0x108] sm:$0xff]  ;;  %v2279_v16 = vld [vmem:[%s7525_s3 + $0x90] sm:$0xff] }
 0x13a   : > { %1610 = vrot.lane.b32.xlu0 %v6072_v62, %s7514_s21  ;;  %v1595_v41 = vrot.slane %v1588_v18, %v5742_v24  ;;  %v6117_v56 = vrot.slane %v1587_v60, %v5742_v24  ;;  %v1661_v25 = vcombine.low %v5885_v23, %v6106_v42  ;;  %v1682_v8 = vrot.slane %v890_v37, %v5742_v24  ;;  %v2293_v13 = vld [vmem:[%s7525_s3 + $0x100] sm:$0xff]  ;;  %v2280_v58 = vld [vmem:[%s7525_s3 + $0x98] sm:$0xff] }
 0x13b   : > { %v6123_v48 = vcombine.low %v1559_v36, %v1566_v27  ;;  %v1668_v9 = vrot.slane %v1660_v43, %v5742_v24  ;;  %v928_v61 = vcombine.low %v6091_v50, %v6097_v34  ;;  %v2052_v33 = vrot.slane %v2013_v39, %v5742_v24  ;;  %v2311_v27 = vld [vmem:[%s7525_s3 + $0x190] sm:$0xff]  ;;  %v2312_v60 = vld [vmem:[%s7525_s3 + $0x198] sm:$0xff] }
 0x13c   : > { %v1603_v23 = vcombine.low %v1595_v41, %v6117_v56  ;;  %v1675_v52 = vrot.slane %v1661_v25, %v5742_v24  ;;  %v1697_v12 = vrot.slane %v1682_v8, %v5742_v24  ;;  %v1315_v10 = vcombine.low %v5764_v53, %v5767_v54  ;;  %v2263_v36 = vld [vmem:[%s7525_s3 + $0x10] sm:$0xff]  ;;  %v2264_v37 = vld [vmem:[%s7525_s3 + $0x18] sm:$0xff]  ;;  %v2281_v25 = vld [vmem:[%s7525_s3 + $0xa0] sm:$0xff] }
 0x13d   : > { %1699 = vrot.lane.b32.xlu1 %v6123_v48, %s7526_s15  ;;  %v5199_v28 = vpack.c.bf16 %v2278_v63, %v2277_v15  ;;  %v5231_v20 = vpack.c.bf16 %v2310_v11, %v2309_v40  ;;  %v5201_v51 = vpack.c.bf16 %v2262_v30, %v2261_v59  ;;  %v2295_v43 = vld [vmem:[%s7525_s3 + $0x110] sm:$0xff]  ;;  %v5233_v39 = vpack.c.bf16 %v2294_v31, %v2293_v13  ;;  %v2296_v41 = vld [vmem:[%s7525_s3 + $0x118] sm:$0xff]  ;;  %v2313_v40 = vld [vmem:[%s7525_s3 + $0x1a0] sm:$0xff] }
 0x13e   : > { %1522 = vrot.lane.b32.xlu0 %v6108_v45, %s7514_s21  ;;  %v6153_v32 = vrot.slane %v1603_v23, %v5742_v24  ;;  %v1683_v46 = vcombine.low %v1668_v9, %v1675_v52  ;;  %v2282_v9 = vld [vmem:[%s7525_s3 + $0xa8] sm:$0xff]  ;;  %v6210_v52 = vrot.slane %v1315_v10, %v5742_v24  ;;  %v5203_v8 = vpack.c.bf16 %v2280_v58, %v2279_v16  ;;  %v2265_v59 = vld [vmem:[%s7525_s3 + $0x20] sm:$0xff]  ;;  %v2283_v16 = vld [vmem:[%s7525_s3 + $0xb0] sm:$0xff] }
 0x13f   : > { %5200 = vmatprep.subr.bf16.mxu1 %v5199_v28  ;;  %5232 = vmatprep.subr.bf16.mxu0 %v5231_v20  ;;  %v5235_v11 = vpack.c.bf16 %v2312_v60, %v2311_v27  ;;  %v2266_v30 = vld [vmem:[%s7525_s3 + $0x28] sm:$0xff]  ;;  %v5207_v13 = vpack.c.bf16 %v2282_v9, %v2281_v25  ;;  %v2284_v10 = vld [vmem:[%s7525_s3 + $0xb8] sm:$0xff]  ;;  %v2285_v9 = vld [vmem:[%s7525_s3 + $0xc0] sm:$0xff] }
 0x140   : > { %v6178_v18 = vrot.slane %v6153_v32, %v5742_v24  ;;  %v1690_v54 = vrot.slane %v1683_v46, %v5742_v24  ;;  %5202 = vmatpush3.bf16.msra.mxu1 %v5201_v51  ;;  %5234 = vmatpush3.bf16.msra.mxu0 %v5233_v39  ;;  %v5205_v46 = vpack.c.bf16 %v2264_v37, %v2263_v36  ;;  %v2298_v31 = vld [vmem:[%s7525_s3 + $0x128] sm:$0xff]  ;;  %v2315_v51 = vld [vmem:[%s7525_s3 + $0x1b0] sm:$0xff]  ;;  %v2316_v58 = vld [vmem:[%s7525_s3 + $0x1b8] sm:$0xff] }
 0x141   : > { %1612 = vrot.lane.b32.xlu1 %v1603_v23, %s7526_s15  ;;  %v2314_v23 = vld [vmem:[%s7525_s3 + $0x1a8] sm:$0xff]  ;;  %v1330_v28 = vcombine.low %v6097_v34, %v6210_v52  ;;  %5204 = vmatprep.subr.bf16.mxu1 %v5203_v8  ;;  %v5209_v27 = vpack.c.bf16 %v2266_v30, %v2265_v59  ;;  %v2267_v36 = vld [vmem:[%s7525_s3 + $0x30] sm:$0xff]  ;;  %v2268_v37 = vld [vmem:[%s7525_s3 + $0x38] sm:$0xff]  ;;  %v1627_v39 = vrot.slane %v4739_v38, %v5742_v24 }
 0x142   : > { %v6201_v15 = vcombine.low %v2052_v33, %v6178_v18  ;;  %v1698_v63 = vcombine.low %v1690_v54, %v1697_v12  ;;  %v2297_v33 = vld [vmem:[%s7525_s3 + $0x120] sm:$0xff]  ;;  %v5237_v12 = vpack.c.bf16 %v2296_v41, %v2295_v43  ;;  %5236 = vmatprep.subr.bf16.mxu0 %v5235_v11  ;;  %v5239_v20 = vpack.c.bf16 %v2314_v23, %v2313_v40  ;;  %v2299_v43 = vld [vmem:[%s7525_s3 + $0x130] sm:$0xff]  ;;  %v2300_v25 = vld [vmem:[%s7525_s3 + $0x138] sm:$0xff] }
 0x143   : > { %v5241_v60 = vpack.c.bf16 %v2298_v31, %v2297_v33  ;;  %v5211_v54 = vpack.c.bf16 %v2284_v10, %v2283_v16  ;;  %v5243_v41 = vpack.c.bf16 %v2316_v58, %v2315_v51  ;;  %v2317_v40 = vld [vmem:[%s7525_s3 + $0x1c0] sm:$0xff]  ;;  %v5213_v17 = vpack.c.bf16 %v2268_v37, %v2267_v36  ;;  %v2270_v11 = vld [vmem:[%s7525_s3 + $0x48] sm:$0xff]  ;;  %v2319_v16 = vld [vmem:[%s7525_s3 + $0x1d0] sm:$0xff] }
 0x144   : > { %1701 = vrot.lane.b32.xlu0 %v1698_v63, %s7526_s15  ;;  %5206 = vmatpush3.bf16.msra.mxu1 %v5205_v46  ;;  %v2286_v63 = vld [vmem:[%s7525_s3 + $0xc8] sm:$0xff]  ;;  %v5245_v38 = vpack.c.bf16 %v2300_v25, %v2299_v43  ;;  %v2269_v8 = vld [vmem:[%s7525_s3 + $0x40] sm:$0xff]  ;;  %v5247_v30 = vpack.c.bf16 %v2318_v4, %v2317_v40  ;;  %v2287_v46 = vld [vmem:[%s7525_s3 + $0xd0] sm:$0xff]  ;;  %v1642_v31 = vcombine.low %v1627_v39, %v5952_v57 }
 0x145   : > { %5238 = vmatpush3.bf16.msra.mxu0 %v5237_v12  ;;  %5208 = vmatprep.subr.bf16.mxu1 %v5207_v13  ;;  %v5215_v23 = vpack.c.bf16 %v2286_v63, %v2285_v9  ;;  %v2301_v59 = vld [vmem:[%s7525_s3 + $0x140] sm:$0xff]  ;;  %v2302_v33 = vld [vmem:[%s7525_s3 + $0x148] sm:$0xff]  ;;  %v2288_v12 = vld [vmem:[%s7525_s3 + $0xd8] sm:$0xff]  ;;  %v1641_v13 = vrot.slane %v6106_v42, %v5742_v24 }
 0x146   : > { %5240 = vmatprep.subr.bf16.mxu0 %v5239_v20  ;;  %v2320_v10 = vld [vmem:[%s7525_s3 + $0x1d8] sm:$0xff]  ;;  %v5217_v20 = vpack.c.bf16 %v2270_v11, %v2269_v8  ;;  %v6295_v51 = vrot.slane %v1642_v31, %v5742_v24  ;;  %v5249_v42 = vpack.c.bf16 %v2302_v33, %v2301_v59  ;;  %v5219_v57 = vpack.c.bf16 %v2288_v12, %v2287_v46  ;;  %v2289_v43 = vld [vmem:[%s7525_s3 + $0xe0] sm:$0xff]  ;;  %v2290_v39 = vld [vmem:[%s7525_s3 + $0xe8] sm:$0xff] }
 0x147   : > { %v6298_v58 = vrot.slane %v1641_v13, %v5742_v24  ;;  %v5251_v36 = vpack.c.bf16 %v2320_v10, %v2319_v16  ;;  %v2304_v37 = vld [vmem:[%s7525_s3 + $0x158] sm:$0xff]  ;;  %v2321_v25 = vld [vmem:[%s7525_s3 + $0x1e0] sm:$0xff]  ;;  %v2322_v9 = vld [vmem:[%s7525_s3 + $0x1e8] sm:$0xff]  ;;  %v5223_v4 = vpack.c.bf16 %v2290_v39, %v2289_v43  ;;  %v643_v39 = vcombine.high %v5764_v53, %v5764_v53 }
 0x148   : > { %5210 = vmatpush3.bf16.msra.mxu1 %v5209_v27  ;;  %v2271_v27 = vld [vmem:[%s7525_s3 + $0x50] sm:$0xff]  ;;  %v5255_v8 = vpack.c.bf16 %v2322_v9, %v2321_v25  ;;  %v2306_v11 = vld [vmem:[%s7525_s3 + $0x168] sm:$0xff]  ;;  %v2324_v46 = vld [vmem:[%s7525_s3 + $0x1f8] sm:$0xff]  ;;  %v2006_v25 = vrot.slane %v6072_v62, %v5742_v24  ;;  %v1810_v9 = vrot.slane %v5990_v22, %v5742_v24 }
 0x149   : > { %5242 = vmatpush3.bf16.msra.mxu0 %v5241_v60  ;;  %5212 = vmatprep.subr.bf16.mxu1 %v5211_v54  ;;  %v2272_v60 = vld [vmem:[%s7525_s3 + $0x58] sm:$0xff]  ;;  %v2303_v54 = vld [vmem:[%s7525_s3 + $0x150] sm:$0xff] }
 0x14a   : > { %5244 = vmatprep.subr.bf16.mxu0 %v5243_v41  ;;  %v1657_v41 = vcombine.low %v6295_v51, %v6298_v58  ;;  %v5221_v63 = vpack.c.bf16 %v2272_v60, %v2271_v27  ;;  %v5253_v40 = vpack.c.bf16 %v2304_v37, %v2303_v54  ;;  %v2291_v59 = vld [vmem:[%s7525_s3 + $0xf0] sm:$0xff]  ;;  %v2276_v10 = vld [vmem:[%s7525_s3 + $0x78] sm:$0xff]  ;;  %v2325_v27 = vld [vmem:[%s7525_s3 + $0x200] sm:$0xff] }
 0x14b   : > { %v2323_v33 = vld [vmem:[%s7525_s3 + $0x1f0] sm:$0xff]  ;;  %v2326_v60 = vld [vmem:[%s7525_s3 + $0x208] sm:$0xff] }
 0x14c   : > { %5214 = vmatpush3.bf16.msra.mxu1 %v5213_v17  ;;  %v2273_v17 = vld [vmem:[%s7525_s3 + $0x60] sm:$0xff]  ;;  %v2275_v16 = vld [vmem:[%s7525_s3 + $0x70] sm:$0xff]  ;;  %v6368_v37 = vpack.c.bf16 %v2326_v60, %v2325_v27 }
 0x14d   : > { %5246 = vmatpush3.bf16.msra.mxu0 %v5245_v38  ;;  %5216 = vmatprep.subr.bf16.mxu1 %v5215_v23  ;;  %v2274_v38 = vld [vmem:[%s7525_s3 + $0x68] sm:$0xff]  ;;  %v2305_v23 = vld [vmem:[%s7525_s3 + $0x160] sm:$0xff]  ;;  %v5229_v54 = vpack.c.bf16 %v2276_v10, %v2275_v16  ;;  %v1908_v16 = vrot.slane %v6058_v14, %v5742_v24 }
 0x14e   : > { %5248 = vmatprep.subr.bf16.mxu0 %v5247_v30  ;;  %v2292_v30 = vld [vmem:[%s7525_s3 + $0xf8] sm:$0xff]  ;;  %v5225_v12 = vpack.c.bf16 %v2274_v38, %v2273_v17  ;;  %v5257_v13 = vpack.c.bf16 %v2306_v11, %v2305_v23  ;;  %v2017_v17 = vcombine.high %v2006_v25, %v2006_v25  ;;  %v935_v38 = vrot.slane %v928_v61, %v5742_v24 }
 0x14f   : > { %v5227_v31 = vpack.c.bf16 %v2292_v30, %v2291_v59  ;;  %v1337_v23 = vrot.slane %v1330_v28, %v5742_v24  ;;  %v1821_v11 = vcombine.high %v1810_v9, %v1810_v9 }
 0x150   : > { %5218 = vmatpush3.bf16.msra.mxu1 %v5217_v20  ;;  %v2307_v20 = vld [vmem:[%s7525_s3 + $0x170] sm:$0xff]  ;;  %v2059_v50 = vrot.slane %v2017_v17, %v5742_v24 }
 0x151   : > { %5250 = vmatpush3.bf16.msra.mxu0 %v5249_v42  ;;  %5220 = vmatprep.subr.bf16.mxu1 %v5219_v57  ;;  %v5259_v42 = vpack.c.bf16 %v2324_v46, %v2323_v33  ;;  %v2308_v57 = vld [vmem:[%s7525_s3 + $0x178] sm:$0xff]  ;;  %v6404_v28 = vrot.slane %v1821_v11, %v5742_v24  ;;  %v2045_v46 = vrot.slane %v2006_v25, %v5742_v24 }
 0x152   : > { %5252 = vmatprep.subr.bf16.mxu0 %v5251_v36  ;;  %v5261_v36 = vpack.c.bf16 %v2308_v57, %v2307_v20 }
 0x153   : > { %v4758_v11 = vcombine.low %v2045_v46, %v2059_v50 }
 0x154   : > { %5222 = vmatpush3.bf16.msra.mxu1 %v5221_v63  ;;  %v927_v63 = vrot.slane %v5764_v53, %v5742_v24  ;;  %v2202_v53 = vrot.slane %v1735_v2, %v5742_v24 }
 0x155   : > { %5254 = vmatpush3.bf16.msra.mxu0 %v5253_v40  ;;  %5224 = vmatprep.subr.bf16.mxu1 %v5223_v4  ;;  %v1329_v40 = vrot.slane %v643_v39, %v5742_v24 }
 0x156   : > { %5256 = vmatprep.subr.bf16.mxu0 %v5255_v8  ;;  %v4741_v8 = vcombine.low %v5971_v5, %v5971_v5  ;;  %v942_v59 = vrot.slane %v927_v63, %v5742_v24  ;;  %v6401_v5 = vrot.slane %v1810_v9, %v5742_v24  ;;  %v2213_v2 = vcombine.high %v2202_v53, %v2202_v53 }
 0x157   : > { %v1344_v30 = vrot.slane %v1329_v40, %v5742_v24  ;;  %v2241_v39 = vrot.slane %v2202_v53, %v5742_v24  ;;  %v2520_v9 = vrot.slane %v6201_v15, %v5742_v24  ;;  %v1919_v40 = vcombine.high %v1908_v16, %v1908_v16 }
 0x158   : > { %5226 = vmatpush3.bf16.msra.mxu1 %v5225_v12  ;;  %v943_v61 = vcombine.low %v935_v38, %v942_v59  ;;  %v1817_v52 = vrot.slane %v4741_v8, %v5742_v24  ;;  %v4748_v60 = vcombine.low %v6401_v5, %v6404_v28  ;;  %v2255_v25 = vrot.slane %v2213_v2, %v5742_v24 }
 0x159   : > { %5258 = vmatpush3.bf16.msra.mxu0 %v5257_v13  ;;  %5228 = vmatprep.subr.bf16.mxu1 %v5227_v31  ;;  %v1345_v34 = vcombine.low %v1337_v23, %v1344_v30  ;;  %v4742_v31 = vcombine.low %v6052_v0, %v6052_v0  ;;  %v6445_v15 = vrot.slane %v1908_v16, %v5742_v24  ;;  %v2329_v16 = vld [vmem:[%s7525_s3 + $0x220] sm:$0xff] }
 0x15a   : > { %5260 = vmatprep.subr.bf16.mxu0 %v5259_v42  ;;  %v4760_v42 = vcombine.high %v2045_v46, %v2059_v50  ;;  %v1856_v27 = vrot.slane %v1817_v52, %v5742_v24  ;;  %v6461_v50 = vrot.slane %v1919_v40, %v5742_v24  ;;  %v4768_v52 = vcombine.low %v2241_v39, %v2255_v25 }
 0x15b   : > { %v1915_v63 = vrot.slane %v4742_v31, %v5742_v24  ;;  %v2328_v31 = vld [vmem:[%s7525_s3 + $0x218] sm:$0xff] }
 0x15c   : > { %5230 = vmatpush3.bf16.msra.mxu1 %v5229_v54  ;;  %v4744_v54 = vcombine.low %v6117_v56, %v6117_v56  ;;  %v2506_v17 = vrot.slane %v4760_v42, %v5742_v24  ;;  %v2330_v42 = vld [vmem:[%s7525_s3 + $0x228] sm:$0xff] }
 0x15d   : > { %5262 = vmatpush3.bf16.msra.mxu0 %v5261_v36  ;;  %5264 = vmatprep.subr.bf16.mxu1 %v6368_v37 }
 0x15e   : > { %v6448_v53 = vrot.slane %v4744_v54, %v5742_v24  ;;  %v6483_v54 = vrot.slane %v4758_v11, %v5742_v24  ;;  %v2331_v11 = vld [vmem:[%s7525_s3 + $0x230] sm:$0xff] }
 0x187   : > { %v1301_v43 = vpop.permute.xlu0 %1300 }
 0x188   : > { %v6408_v12 = vsel %vm1736_vm3, %v943_v61, %v1301_v43  ;;  %v4745_v43 = vcombine.low %v6016_v35, %v6016_v35  ;;  %v4750_v35 = vcombine.high %v6401_v5, %v6404_v28 }
 0x18a   : > { %v2209_v61 = vrot.slane %v4745_v43, %v5742_v24 }
 0x18c   : > { %v1303_v4 = vpop.permute.xlu0 %1302 }
 0x18d   : > { %v1738_v56 = vsel %vm1736_vm3, %v5941_v44, %v1303_v4  ;;  %v6454_v4 = vcombine.low %v2506_v17, %v2520_v9 }
 0x18f   : > { %v2561_v9 = vrot.slane %v6454_v4, %v5742_v24 }
 0x191   : > { %v6397_v33 = vpop.permute.xlu1 %1604 }
 0x192   : > { %v1515_v47 = vpop.permute.xlu0 %1514 }
 0x193   : > { %v6411_v13 = vsel %vm1736_vm3, %v1345_v34, %v1515_v47  ;;  %v1954_v34 = vrot.slane %v1915_v63, %v5742_v24 }
 0x194   : > { %v1771_v10 = vcombine.low %v6408_v12, %v6411_v13  ;;  %v1772_v20 = vcombine.high %v6408_v12, %v6411_v13 }
 0x196   : > { %v1517_v57 = vpop.permute.xlu1 %1516  ;;  %v1307_v36 = vpop.permute.xlu0 %1306 }
 0x197   : > { %v1743_v0 = vsel %vm1736_vm3, %v5937_v26, %v1517_v57  ;;  %v6439_v26 = vsel %vm1736_vm3, %v6041_v29, %v1307_v36  ;;  %v2115_v29 = vcombine.high %v6153_v32, %v6153_v32  ;;  %v6480_v57 = vcombine.low %v1856_v27, %v6445_v15 }
 0x198   : > { %v1869_v38 = vcombine.low %v1738_v56, %v1743_v0  ;;  %v1870_v23 = vcombine.high %v1738_v56, %v1743_v0  ;;  %v2150_v0 = vrot.slane %v6448_v53, %v5742_v24  ;;  %v4770_v36 = vcombine.high %v2241_v39, %v2255_v25 }
 0x199   : > { %v6488_v43 = vrot.slane %v2115_v29, %v5742_v24  ;;  %v1747_v27 = vsel %vm1736_vm3, %v5908_v49, %v6397_v33  ;;  %v6501_v39 = vpack.c.bf16 %v2330_v42, %v2329_v16  ;;  %v2332_v49 = vld [vmem:[%s7525_s3 + $0x238] sm:$0xff]  ;;  %v1782_v33 = vrot.slane %v1771_v10, %v5742_v24 }
 0x19a   : > { %v1607_v8 = vpop.permute.xlu1 %1606  ;;  %v1880_v32 = vrot.slane %v1869_v38, %v5742_v24  ;;  %v1887_v47 = vrot.slane %v1870_v23, %v5742_v24  ;;  %v6531_v16 = vpack.c.bf16 %v2332_v49, %v2331_v11 }
 0x19b   : > { %v1748_v44 = vsel %vm1736_vm3, %v6028_v21, %v1607_v8  ;;  %v2327_v21 = vld [vmem:[%s7525_s3 + $0x210] sm:$0xff]  ;;  %s431_s3 = sand.u32 1, %s5558_s26  }
 0x19c   : > { %v1871_v59 = vcombine.low %v1748_v44, %v6439_v26  ;;  %v1872_v30 = vcombine.high %v1748_v44, %v6439_v26  ;;  %v6499_v38 = vpack.c.bf16 %v2328_v31, %v2327_v21  ;;  %v1789_v21 = vrot.slane %v1772_v20, %v5742_v24  ;;  %s432_s22 = scalar_lea.vmem [#allocation2], %s431_s3  ;;  %s4651_s21 = scalar_lea.sflag [#allocation3], %s431_s3 }
 0x19d   : > { %s4663_s23 = sshll.u32 %s432_s22, 4  ;;  %s7459_s23 = int_to_ptr.vmem [resolvable:$true] %s4663_s23 }
 0x19e   : > { %v1894_v2 = vrot.slane %v1871_v59, %v5742_v24  ;;  %v1901_v46 = vrot.slane %v1872_v30, %v5742_v24  ;;  %v2637_v30 = vrot.slane %v4770_v36, %v5742_v24  ;;  %s5504_s16 = scalar_lea.vmem %s7459_s23, 16  ;;  %p5511_p0 = scmp.lt.s32.totalorder %s7459_s23, %s5509_s1 }
 0x19f   : > { %v1521_v29 = vpop.permute.xlu0 %1520  ;;  %p5505_p11 = scmp.ne.s32.totalorder %s7459_s23, %s5504_s16  ;;  %p5512_p1 = scmp.lt.s32.totalorder %s5510_s2, %s5504_s16 }
 0x1a0   : > { %v1916_v63 = vcombine.low %v1880_v32, %v1894_v2  ;;  %v1918_v40 = vcombine.low %v1887_v47, %v1901_v46  ;;  %v1305_v56 = vpop.permute.xlu1 %1304  ;;  %v1917_v44 = vcombine.high %v1880_v32, %v1894_v2  ;;  %v6529_v2 = vrot.slane %v2209_v61, %v5742_v24 }
 0x1a1   : > { %v6497_v17 = vsel %vm1736_vm3, %v5960_v1, %v1305_v56  ;;  %v2623_v1 = vrot.slane %v4768_v52, %v5742_v24  ;;  %p5506_p12 = pnand %p5505_p11, %p5682_p5  ;;  %p5513_p2 = por %p5512_p1, %p5511_p0 }
 0x1a2   : > { %v6504_v25 = vrot.slane %v1918_v40, %v5742_v24  ;;  %v1773_v23 = vcombine.low %v1747_v27, %v6497_v17  ;;  %v1774_v8 = vcombine.high %v1747_v27, %v6497_v17  ;;  %v1926_v59 = vrot.slane %v1916_v63, %v5742_v24 }
 0x1a3   : > { %v6535_v42 = vrot.slane %v1917_v44, %v5742_v24  ;;  %v2643_v61 = vcombine.low %v2623_v1, %v2637_v30  ;;  %v6559_v1 = vrot.slane %v4750_v35, %v5742_v24  ;;  %p5507_p13 = pneg %p5506_p12 }
 0x1a4   : > { %v1964_v47 = vcombine.low %v6504_v25, %v1954_v34  ;;  %v1796_v46 = vrot.slane %v1773_v23, %v5742_v24  ;;  %v1803_v31 = vrot.slane %v1774_v8, %v5742_v24  ;;  %v1519_v52 = vpop.permute.xlu1 %1518  ;;  %v1963_v32 = vcombine.high %v1926_v59, %v6445_v15 }
 0x1a5   : > { %v1744_v10 = vsel %vm1736_vm3, %v5990_v22, %v1519_v52  ;;  %v6542_v22 = vrot.slane %v4748_v60, %v5742_v24  ;;  %v6550_v8 = vsel %vm1736_vm3, %v6058_v14, %v1521_v29  ;;  %p5514_p3 = pnand %p5513_p2, %p5507_p13 }
 0x1a6   : > { %v4756_v12 = vcombine.high %v6461_v50, %v1964_v47  ;;  %v1818_v13 = vcombine.low %v1782_v33, %v1796_v46  ;;  %v1819_v20 = vcombine.high %v1782_v33, %v1796_v46  ;;  %v1820_v34 = vcombine.low %v1789_v21, %v1803_v31 }
 0x1a7   : > { %v1967_v36 = vcombine.low %v6497_v17, %v1744_v10  ;;  %v4753_v60 = vcombine.low %v6535_v42, %v1963_v32  ;;  %v6570_v47 = vrot.slane %v2643_v61, %v5742_v24  ;;  %v2065_v5 = vcombine.low %v6439_v26, %v6550_v8 }
 0x1a8   : > { %v2478_v63 = vrot.slane %v4756_v12, %v5742_v24  ;;  %v1609_v40 = vpop.permute.xlu1 %1608  ;;  %v1828_v56 = vrot.slane %v1818_v13, %v5742_v24  ;;  %v1835_v27 = vrot.slane %v1820_v34, %v5742_v24  ;;  %v1842_v23 = vrot.slane %v1819_v20, %v5742_v24  ;;  %v1309_v11 = vpop.permute.xlu0 %1308 }
 0x1a9   : > { %v1749_v49 = vsel %vm1736_vm3, %v5973_v7, %v1609_v40  ;;  %v6564_v44 = vsel %vm1736_vm3, %v6024_v19, %v1309_v11  ;;  %v2389_v7 = vrot.slane %v6480_v57, %v5742_v24  ;;  %v1978_v28 = vrot.slane %v1967_v36, %v5742_v24 }
 0x1aa   : > { %v2523_v33 = vcombine.low %v2478_v63, %v6483_v54  ;;  %v4747_v14 = vcombine.low %v1828_v56, %v1842_v23  ;;  %v4749_v29 = vcombine.high %v1828_v56, %v1842_v23  ;;  %v1969_v30 = vcombine.low %v1749_v49, %v6564_v44 }
 0x1ab   : > { %v4751_v21 = vcombine.low %v1835_v27, %v1926_v59  ;;  %v1970_v54 = vcombine.high %v1749_v49, %v6564_v44  ;;  %v2396_v52 = vrot.slane %v4753_v60, %v5742_v24  ;;  %v1966_v13 = vcombine.high %v6535_v42, %v6461_v50 }
 0x1ac   : > { %v2354_v35 = vrot.slane %v4747_v14, %v5742_v24  ;;  %v2368_v19 = vrot.slane %v4749_v29, %v5742_v24  ;;  %v1992_v46 = vrot.slane %v1969_v30, %v5742_v24  ;;  %v1611_v59 = vpop.permute.xlu0 %1610  ;;  %v2540_v20 = vrot.slane %v2523_v33, %v5742_v24 }
 0x1ad   : > { %v2382_v31 = vrot.slane %v4751_v21, %v5742_v24  ;;  %v1968_v34 = vcombine.high %v6497_v17, %v1744_v10  ;;  %v1965_v40 = vcombine.low %v6535_v42, %v6461_v50  ;;  %v1999_v11 = vrot.slane %v1970_v54, %v5742_v24 }
 0x1ae   : > { %v2405_v32 = vcombine.high %v2354_v35, %v2368_v19  ;;  %v2404_v12 = vcombine.low %v2354_v35, %v2368_v19  ;;  %v2014_v36 = vcombine.low %v1978_v28, %v1992_v46  ;;  %v2015_v61 = vcombine.high %v1978_v28, %v1992_v46 }
 0x1af   : > { %v2408_v63 = vcombine.high %v2382_v31, %v2396_v52  ;;  %v2407_v27 = vcombine.low %v2382_v31, %v2396_v52  ;;  %v2066_v10 = vcombine.high %v6439_v26, %v6550_v8  ;;  %v4755_v50 = vcombine.low %v1966_v13, %v6504_v25  ;;  %v1700_v35 = vpop.permute.xlu1 %1699 }
 0x1b0   : > { %v2430_v56 = vrot.slane %v2405_v32, %v5742_v24  ;;  %v2416_v23 = vrot.slane %v2404_v12, %v5742_v24  ;;  %v2024_v49 = vrot.slane %v2014_v36, %v5742_v24  ;;  %v2038_v60 = vrot.slane %v2015_v61, %v5742_v24  ;;  %v1523_v33 = vpop.permute.xlu0 %1522 }
 0x1b1   : > { %v2451_v17 = vrot.slane %v2408_v63, %v5742_v24  ;;  %v2437_v14 = vrot.slane %v2407_v27, %v5742_v24  ;;  %v6600_v42 = vcombine.low %v2540_v20, %v2561_v9  ;;  %v1985_v29 = vrot.slane %v1968_v34, %v5742_v24 }
 0x1b2   : > { %v4757_v30 = vcombine.low %v2024_v49, %v2038_v60  ;;  %v1750_v21 = vsel %vm1736_vm3, %v6061_v55, %v1611_v59  ;;  %v1746_v28 = vsel %vm1736_vm3, %v6072_v62, %v1523_v33  ;;  %v1752_v26 = vsel %vm1736_vm3, %v6108_v45, %v1700_v35 }
 0x1b3   : > { %v2455_v8 = vcombine.low %v2430_v56, %v2451_v17  ;;  %v2456_v25 = vcombine.high %v2430_v56, %v2451_v17  ;;  %v2452_v19 = vcombine.low %v2416_v23, %v2437_v14  ;;  %v2016_v54 = vcombine.low %v1985_v29, %v1999_v11  ;;  %v1613_v12 = vpop.permute.xlu1 %1612 }
 0x1b4   : > { %v2067_v4 = vcombine.low %v1750_v21, %v1752_v26  ;;  %v2068_v9 = vcombine.high %v1750_v21, %v1752_v26  ;;  %v6610_v46 = vcombine.high %v1965_v40, %v6445_v15  ;;  %v2163_v31 = vcombine.low %v6564_v44, %v1746_v28 }
 0x1b5   : > { %v2164_v55 = vcombine.high %v6564_v44, %v1746_v28  ;;  %2818 = vmatprep.mubr.f32.mxu1 %v2455_v8  ;;  %2903 = vmatprep.mubr.f32.mxu0 %v2456_v25  ;;  %v2453_v62 = vcombine.high %v2416_v23, %v2437_v14  ;;  %v2076_v59 = vrot.slane %v2065_v5, %v5742_v24 }
 0x1b6   : > { %v2083_v45 = vrot.slane %v2066_v10, %v5742_v24  ;;  %v2090_v52 = vrot.slane %v2067_v4, %v5742_v24  ;;  %v2097_v32 = vrot.slane %v2068_v9, %v5742_v24  ;;  %2819 = vmatmul.mubr.f32.vlgmr.msra.gmra.mrb[0].mxu1 %v2452_v19  ;;  %v4759_v13 = vcombine.high %v2024_v49, %v2038_v60  ;;  %v1702_v56 = vpop.permute.xlu0 %1701 }
 0x1b7   : > { %2904 = vmatmul.mubr.f32.vlgmr.msra.gmra.mrb[14].mxu0 %v2453_v62  ;;  %5266 = vmatpush3.bf16.msra.mxu1 %v6368_v37  ;;  %v2471_v15 = vrot.slane %v4755_v50, %v5742_v24  ;;  %v2485_v44 = vrot.slane %v4757_v30, %v5742_v24  ;;  %v1751_v5 = vsel %vm1736_vm3, %v6123_v48, %v1613_v12 }
 0x1b8   : > { %v2112_v20 = vcombine.low %v2076_v59, %v2090_v52  ;;  %v2113_v34 = vcombine.high %v2076_v59, %v2090_v52  ;;  %v2114_v36 = vcombine.low %v2083_v45, %v2097_v32  ;;  %5268 = vmatprep.subr.bf16.mxu1 %v6499_v38  ;;  %v2031_v61 = vrot.slane %v2016_v54, %v5742_v24 }
 0x1b9   : > { %v2174_v63 = vrot.slane %v2163_v31, %v5742_v24  ;;  %v2181_v40 = vrot.slane %v2164_v55, %v5742_v24  ;;  %v2403_v37 = vrot.slane %v6610_v46, %v5742_v24  ;;  %v1753_v48 = vsel %vm1736_vm3, %v1657_v41, %v1702_v56 }
 0x1ba   : > { %v2122_v27 = vrot.slane %v2112_v20, %v5742_v24  ;;  %v2129_v23 = vrot.slane %v2114_v36, %v5742_v24  ;;  %v2136_v11 = vrot.slane %v2113_v34, %v5742_v24  ;;  %v2165_v49 = vcombine.low %v1751_v5, %v1753_v48 }
 0x1bb   : > { %v2166_v60 = vcombine.high %v1751_v5, %v1753_v48  ;;  %v2499_v33 = vrot.slane %v4759_v13, %v5742_v24  ;;  %v2522_v17 = vcombine.high %v2471_v15, %v2485_v44  ;;  %5270 = vmatpush3.bf16.msra.mxu1 %v6499_v38  ;;  %v2521_v30 = vcombine.low %v2471_v15, %v2485_v44 }
 0x1bc   : > { %v2159_v10 = vcombine.high %v2122_v27, %v6178_v18  ;;  %v2160_v14 = vcombine.low %v2129_v23, %v2150_v0  ;;  %v2161_v50 = vcombine.low %v2136_v11, %v6488_v43  ;;  %v2162_v29 = vcombine.high %v2136_v11, %v6488_v43  ;;  %5272 = vmatprep.subr.bf16.mxu1 %v6501_v39 }
 0x1bd   : > { %v4761_v51 = vcombine.low %v2031_v61, %v2122_v27  ;;  %v2188_v58 = vrot.slane %v2165_v49, %v5742_v24  ;;  %v2195_v41 = vrot.slane %v2166_v60, %v5742_v24  ;;  %v2547_v55 = vrot.slane %v2522_v17, %v5742_v24 }
 0x1be   : > { %v4764_v38 = vcombine.high %v2161_v50, %v6178_v18  ;;  %v4765_v21 = vcombine.low %v2162_v29, %v2129_v23  ;;  %v4766_v28 = vcombine.high %v6488_v43, %v2160_v14  ;;  %v4763_v35 = vcombine.low %v2136_v11, %v2159_v10 }
 0x1bf   : > { %v2210_v53 = vcombine.low %v2174_v63, %v2188_v58  ;;  %v2211_v0 = vcombine.high %v2174_v63, %v2188_v58  ;;  %v2212_v26 = vcombine.low %v2181_v40, %v2195_v41  ;;  %v2513_v8 = vrot.slane %v4761_v51, %v5742_v24  ;;  %5274 = vmatpush3.bf16.msra.mxu1 %v6501_v39 }
 0x1c0   : > { %v2588_v25 = vrot.slane %v4763_v35, %v5742_v24  ;;  %v2602_v19 = vrot.slane %v4765_v21, %v5742_v24  ;;  %5276 = vmatprep.subr.bf16.mxu1 %v6531_v16  ;;  %v2595_v54 = vrot.slane %v4764_v38, %v5742_v24  ;;  %v2609_v18 = vrot.slane %v4766_v28, %v5742_v24 }
 0x1c1   : > { %v2220_v43 = vrot.slane %v2210_v53, %v5742_v24  ;;  %v2227_v4 = vrot.slane %v2212_v26, %v5742_v24  ;;  %v2234_v9 = vrot.slane %v2211_v0, %v5742_v24  ;;  %v2525_v31 = vcombine.high %v2499_v33, %v2513_v8 }
 0x1c2   : > { %v2524_v39 = vcombine.low %v2499_v33, %v2513_v8  ;;  %v2533_v62 = vrot.slane %v2521_v30, %v5742_v24  ;;  %v2640_v59 = vcombine.low %v2595_v54, %v2609_v18  ;;  %v2639_v15 = vcombine.high %v2588_v25, %v2602_v19 }
 0x1c3   : > { %v4767_v45 = vcombine.low %v2220_v43, %v2234_v9  ;;  %v4769_v52 = vcombine.high %v2220_v43, %v2234_v9  ;;  %v2568_v32 = vrot.slane %v2525_v31, %v5742_v24  ;;  %v2258_v12 = vcombine.low %v2227_v4, %v6529_v2  ;;  %5278 = vmatpush3.bf16.msra.mxu1 %v6531_v16 }
 0x1c4   : > { %v2554_v13 = vrot.slane %v2524_v39, %v5742_v24  ;;  %v2638_v44 = vcombine.low %v2588_v25, %v2602_v19  ;;  %v2657_v20 = vrot.slane %v2640_v59, %v5742_v24  ;;  %v2409_v48 = vcombine.low %v2389_v7, %v2403_v37 }
 0x1c5   : > { %v2572_v34 = vcombine.low %v2547_v55, %v2568_v32  ;;  %v2573_v36 = vcombine.high %v2547_v55, %v2568_v32  ;;  %v2616_v5 = vrot.slane %v4767_v45, %v5742_v24  ;;  %v2630_v61 = vrot.slane %v4769_v52, %v5742_v24 }
 0x1c6   : > { %v2569_v63 = vcombine.low %v2533_v62, %v2554_v13  ;;  %v2570_v40 = vcombine.high %v2533_v62, %v2554_v13  ;;  %v2698_v56 = vrot.slane %v2258_v12, %v5742_v24  ;;  %v2688_v27 = vcombine.low %v2657_v20, %v6570_v47 }
 0x1c7   : > { %2823 = vmatprep.mubr.f32.mxu1 %v2572_v34  ;;  %2908 = vmatprep.mubr.f32.mxu0 %v2573_v36  ;;  %v2642_v16 = vcombine.high %v2616_v5, %v2630_v61  ;;  %v2641_v23 = vcombine.low %v2616_v5, %v2630_v61  ;;  %v2664_v49 = vrot.slane %v2639_v15, %v5742_v24 }
 0x1c8   : > { %2824 = vmatmul.mubr.f32.gmra.mrb[2].mxu1 %v2569_v63  ;;  %2909 = vmatmul.mubr.f32.gmra.mrb[16].mxu0 %v2570_v40  ;;  %v2706_v11 = vcombine.high %v2698_v56, %v2698_v56  ;;  %v2650_v47 = vrot.slane %v2638_v44, %v5742_v24  ;;  %v2406_v10 = vcombine.low %v6542_v22, %v6559_v1 }
 0x1c9   : > { %v2685_v60 = vrot.slane %v2642_v16, %v5742_v24  ;;  %v2671_v33 = vrot.slane %v2641_v23, %v5742_v24  ;;  %v2713_v57 = vrot.slane %v2698_v56, %v5742_v24  ;;  %v2444_v37 = vrot.slane %v2409_v48, %v5742_v24 }
 0x1ca   : > { %v2727_v17 = vrot.slane %v2706_v11, %v5742_v24  ;;  %v2423_v51 = vrot.slane %v2406_v10, %v5742_v24  ;;  %v4771_v22 = vcombine.low %v6529_v2, %v6529_v2  ;;  %v4746_v2 = vld [vmem:[%s7504_s4] ss:$0 sm:$0xff] }
 0x1cb   : > { %v2689_v14 = vcombine.low %v2664_v49, %v2685_v60  ;;  %v2690_v50 = vcombine.high %v2664_v49, %v2685_v60  ;;  %v2686_v46 = vcombine.low %v2650_v47, %v2671_v33  ;;  %v2687_v29 = vcombine.high %v2650_v47, %v2671_v33 }
 0x1cc   : > { %v2729_v7 = vcombine.high %v2727_v17, %v2727_v17  ;;  %v2728_v58 = vcombine.high %v2713_v57, %v2713_v57  ;;  %v2454_v1 = vcombine.low %v2423_v51, %v2444_v37  ;;  %v2705_v41 = vrot.slane %v4771_v22, %v5742_v24 }
 0x1cd   : > { %2828 = vmatprep.mubr.f32.mxu1 %v2689_v14  ;;  %2913 = vmatprep.mubr.f32.mxu0 %v2690_v50 }
 0x1ce   : > { %2829 = vmatmul.mubr.f32.gmra.mrb[4].mxu1 %v2686_v46  ;;  %2914 = vmatmul.mubr.f32.gmra.mrb[18].mxu0 %v2687_v29  ;;  %v2720_v30 = vrot.slane %v2705_v41, %v5742_v24 }
 0x1cf   : > { %2833 = vmatprep.mubr.f32.mxu1 %v2727_v17  ;;  %2918 = vmatprep.mubr.f32.mxu0 %v2729_v7 }
 0x1d2   : > { %2834 = vmatmul.mubr.f32.gmra.mrb[6].mxu1 %v2713_v57  ;;  %2919 = vmatmul.mubr.f32.gmra.mrb[20].mxu0 %v2728_v58 }
 0x1d3   : > { %5130 = vmatprep.mubr.msk.f32.mxu1 %vm1736_vm3, %v2454_v1 }
 0x1d6   : > { %5131 = vmatmul.mubr.msk.f32.vlgmr.msra.gmra.mrb[8].mxu1 %vm1736_vm3, %v6600_v42 }
 0x1d7   : > { %5133 = vmatprep.mubr.msk.f32.mxu1 %vm1736_vm3, %v2688_v27 }
 0x1da   : > { %5134 = vmatmul.mubr.msk.f32.gmra.mrb[10].mxu1 %vm1736_vm3, %v2720_v30 }
 0x289   : > { %v4841_v38 = vpop.f32.mrb[0].mxu1 }
 0x28a   : > { %v4885_v21 = vpop.f32.mrb[14].mxu0  ;;  %v4842_v28 = vpop.f32.mrb[1].mxu1 }
 0x28b   : > { %v4843_v35 = vadd.f32 %v4842_v28, %v4841_v38  ;;  %v4886_v53 = vpop.f32.mrb[15].mxu0 }
 0x28c   : > { %v4887_v0 = vadd.f32 %v4886_v53, %v4885_v21 }
 0x28d   : > { %v2821_v26 = vadd.f32 %v4843_v35, %v4746_v2 }
 0x28f   : > { %v2906_v8 = vadd.f32 %v4887_v0, %v2821_v26 }
 0x29b   : > { %v4844_v25 = vpop.f32.mrb[2].mxu1  ;;  %v4888_v42 = vpop.f32.mrb[16].mxu0 }
 0x29c   : > { %v4845_v19 = vpop.f32.mrb[3].mxu1  ;;  %v4889_v54 = vpop.f32.mrb[17].mxu0 }
 0x29d   : > { %v4846_v18 = vadd.f32 %v4845_v19, %v4844_v25  ;;  %v4890_v43 = vadd.f32 %v4889_v54, %v4888_v42 }
 0x29f   : > { %v2826_v4 = vadd.f32 %v4846_v18, %v4746_v2 }
 0x2a1   : > { %v4847_v9 = vpop.f32.mrb[4].mxu1  ;;  %v4891_v31 = vpop.f32.mrb[18].mxu0  ;;  %v2911_v55 = vadd.f32 %v4890_v43, %v2826_v4 }
 0x2a2   : > { %v4848_v39 = vpop.f32.mrb[5].mxu1  ;;  %v4892_v62 = vpop.f32.mrb[19].mxu0 }
 0x2a3   : > { %v4849_v59 = vadd.f32 %v4848_v39, %v4847_v9  ;;  %v4893_v45 = vadd.f32 %v4892_v62, %v4891_v31 }
 0x2a5   : > { %v2831_v52 = vadd.f32 %v4849_v59, %v4746_v2  ;;  %v4850_v32 = vpop.f32.mrb[6].mxu1  ;;  %v4894_v12 = vpop.f32.mrb[20].mxu0 }
 0x2a6   : > { %v4851_v13 = vpop.f32.mrb[7].mxu1  ;;  %v4895_v15 = vpop.f32.mrb[21].mxu0 }
 0x2a7   : > { %v4852_v44 = vadd.f32 %v4851_v13, %v4850_v32  ;;  %v4896_v20 = vadd.f32 %v4895_v15, %v4894_v12  ;;  %v2916_v34 = vadd.f32 %v4893_v45, %v2831_v52 }
 0x2a9   : > { %v2836_v36 = vadd.f32 %v4852_v44, %v4746_v2  ;;  %v5132_v5 = vpop.f32.mrb[8].mxu1 }
 0x2aa   : > { %v2996_v61 = vadd.f32 %v5132_v5, %v2911_v55  ;;  %v2990_v63 = vpop.f32.mrb[9].mxu1 }
 0x2ab   : > { %v2991_v40 = vadd.f32 %v2990_v63, %v2906_v8  ;;  %v2921_v56 = vadd.f32 %v4896_v20, %v2836_v36 }
 0x2ac   : > { %v3010_v27 = vmax.f32 %v2996_v61, 0.0 }
 0x2ad   : > { %v3009_v16 = vmax.f32 %v2991_v40, 0.0  ;;  %v5135_v23 = vpop.f32.mrb[10].mxu1 }
 0x2ae   : > { %v3066_v11 = vcombine.high %v3010_v27, %v3010_v27  ;;  %v3073_v48 = vrot.slane %v3010_v27, %v5742_v24  ;;  %v3006_v49 = vadd.f32 %v5135_v23, %v2921_v56  ;;  %v3000_v60 = vpop.f32.mrb[11].mxu1 }
 0x2af   : > { %v3017_v47 = vcombine.high %v3009_v16, %v3009_v16  ;;  %v3024_v33 = vrot.slane %v3009_v16, %v5742_v24  ;;  %v3001_v17 = vadd.f32 %v3000_v60, %v2916_v34 }
 0x2b0   : > { %v3080_v10 = vrot.slane %v3066_v11, %v5742_v24  ;;  %v3081_v14 = vcombine.high %v3073_v48, %v3073_v48  ;;  %v3012_v50 = vmax.f32 %v3006_v49, 0.0  ;;  %v6702_v46 = vrot.slane %v3073_v48, %v5742_v24 }
 0x2b1   : > { %v3031_v29 = vrot.slane %v3017_v47, %v5742_v24  ;;  %v3032_v57 = vcombine.high %v3024_v33, %v3024_v33  ;;  %v6706_v7 = vrot.slane %v3024_v33, %v5742_v24  ;;  %v3011_v22 = vmax.f32 %v3001_v17, 0.0 }
 0x2b2   : > { %v3082_v37 = vcombine.high %v3080_v10, %v3080_v10  ;;  %v6709_v51 = vrot.slane %v3081_v14, %v5742_v24  ;;  %v3170_v58 = vrot.slane %v3012_v50, %v5742_v24  ;;  %v6713_v1 = vrot.slane %v3080_v10, %v5742_v24 }
 0x2b3   : > { %v3033_v41 = vcombine.high %v3031_v29, %v3031_v29  ;;  %v6716_v30 = vrot.slane %v3031_v29, %v5742_v24  ;;  %v6719_v38 = vrot.slane %v3032_v57, %v5742_v24  ;;  %v6728_v35 = vcombine.high %v6706_v7, %v6706_v7 }
 0x2b4   : > { %v3110_v21 = vrot.slane %v3082_v37, %v5742_v24  ;;  %v3113_v2 = vcombine.high %v6709_v51, %v6709_v51  ;;  %v4776_v28 = vcombine.high %v6702_v46, %v6709_v51  ;;  %v3177_v8 = vrot.slane %v3170_v58, %v5742_v24 }
 0x2b5   : > { %v3061_v53 = vrot.slane %v3033_v41, %v5742_v24  ;;  %v3178_v0 = vcombine.low %v6706_v7, %v6719_v38  ;;  %v4778_v26 = vcombine.high %v6706_v7, %v6719_v38  ;;  %v3063_v25 = vcombine.high %v6716_v30, %v6716_v30 }
 0x2b6   : > { %v3114_v42 = vcombine.high %v3110_v21, %v3110_v21  ;;  %v3115_v19 = vcombine.high %v3011_v22, %v3011_v22  ;;  %v3122_v54 = vrot.slane %v3011_v22, %v5742_v24  ;;  %v3231_v18 = vrot.slane %v4776_v28, %v5742_v24 }
 0x2b7   : > { %v3238_v43 = vrot.slane %v6713_v1, %v5742_v24  ;;  %v4777_v4 = vcombine.high %v6716_v30, %v3061_v53  ;;  %v3287_v9 = vrot.slane %v6702_v46, %v5742_v24  ;;  %v3064_v62 = vcombine.high %v6719_v38, %v6719_v38 }
 0x2b8   : > { %v3129_v31 = vrot.slane %v3115_v19, %v5742_v24  ;;  %v3130_v55 = vcombine.high %v3122_v54, %v3122_v54  ;;  %v3138_v39 = vrot.slane %v3122_v54, %v5742_v24  ;;  %v3250_v52 = vcombine.low %v6719_v38, %v6728_v35  ;;  %v3779_v38 = vld [vmem:[%s7505_s5 + $0x98] sm:$0xff] }
 0x2b9   : > { %v3239_v59 = vcombine.low %v3231_v18, %v3238_v43  ;;  %v3280_v45 = vrot.slane %v4777_v4, %v5742_v24  ;;  %v3065_v32 = vcombine.high %v3061_v53, %v3061_v53  ;;  %v6753_v12 = vrot.slane %v3177_v8, %v5742_v24 }
 0x2ba   : > { %v3131_v13 = vcombine.high %v3129_v31, %v3129_v31  ;;  %v6756_v15 = vrot.slane %v3129_v31, %v5742_v24  ;;  %v3152_v44 = vrot.slane %v3130_v55, %v5742_v24  ;;  %v3400_v20 = vcombine.low %v3114_v42, %v3138_v39 }
 0x2bb   : > { %v6760_v34 = vrot.slane %v3239_v59, %v5742_v24  ;;  %v3288_v36 = vcombine.low %v3280_v45, %v3287_v9  ;;  %v3257_v5 = vrot.slane %v3250_v52, %v5742_v24  ;;  %v3160_v63 = vcombine.high %v3138_v39, %v3138_v39 }
 0x2bc   : > { %v6764_v61 = vrot.slane %v3131_v13, %v5742_v24  ;;  %v6768_v40 = vcombine.high %v6756_v15, %v6756_v15  ;;  %v3264_v56 = vrot.slane %v3064_v62, %v5742_v24  ;;  %v3201_v16 = vcombine.low %v3061_v53, %v3063_v25  ;;  %v3777_v62 = vld [vmem:[%s7505_s5 + $0x88] sm:$0xff]  ;;  %v3760_v13 = vld [vmem:[%s7505_s5] sm:$0xff] }
 0x2bd   : > { %3425 = vrot.lane.b32.xlu1 %v6760_v34, %s7526_s15  ;;  %v6774_v27 = vrot.slane %v3288_v36, %v5742_v24  ;;  %v3215_v23 = vrot.slane %v3065_v32, %v5742_v24  ;;  %v3296_v11 = vcombine.low %v3113_v2, %v6713_v1  ;;  %v3432_v48 = vcombine.low %v3138_v39, %v3152_v44  ;;  %v3776_v39 = vld [vmem:[%s7505_s5 + $0x80] sm:$0xff] }
 0x2be   : > { %v3490_v49 = vcombine.low %v6756_v15, %v6764_v61  ;;  %v4779_v60 = vcombine.high %v6756_v15, %v6764_v61  ;;  %v3265_v47 = vcombine.low %v3257_v5, %v3264_v56  ;;  %v3208_v33 = vrot.slane %v3201_v16, %v5742_v24  ;;  %v3809_v56 = vld [vmem:[%s7505_s5 + $0x188] sm:$0xff]  ;;  %v3766_v15 = vld [vmem:[%s7505_s5 + $0x30] sm:$0xff] }
 0x2bf   : > { %3321 = vrot.lane.b32.xlu0 %v6774_v27, %s7526_s15  ;;  %v3303_v17 = vrot.slane %v3296_v11, %v5742_v24  ;;  %v3310_v10 = vrot.slane %v3110_v21, %v5742_v24  ;;  %v3351_v14 = vcombine.low %v3065_v32, %v6702_v46  ;;  %v3112_v57 = vcombine.high %v6713_v1, %v6713_v1  ;;  %v3792_v11 = vld [vmem:[%s7505_s5 + $0x100] sm:$0xff] }
 0x2c0   : > { %v6789_v50 = vrot.slane %v4779_v60, %v5742_v24  ;;  %v3272_v29 = vrot.slane %v3265_v47, %v5742_v24  ;;  %v3374_v37 = vcombine.low %v6713_v1, %v3110_v21  ;;  %v3216_v58 = vcombine.low %v3208_v33, %v3215_v23 }
 0x2c1   : > { %v3311_v22 = vcombine.low %v3303_v17, %v3310_v10  ;;  %v3358_v41 = vrot.slane %v3351_v14, %v5742_v24  ;;  %v3365_v2 = vrot.slane %v6709_v51, %v5742_v24  ;;  %v3388_v53 = vrot.slane %v3112_v57, %v5742_v24  ;;  %v3763_v14 = vld [vmem:[%s7505_s5 + $0x18] sm:$0xff] }
 0x2c2   : > { %v3559_v46 = vcombine.low %v6789_v50, %v6753_v12  ;;  %3319 = vrot.lane.b32.xlu1 %v3272_v29, %s7526_s15  ;;  %v3381_v28 = vrot.slane %v3374_v37, %v5742_v24  ;;  %v3439_v8 = vrot.slane %v3432_v48, %v5742_v24  ;;  %v6805_v1 = vrot.slane %v3216_v58, %v5742_v24  ;;  %v3793_v48 = vld [vmem:[%s7505_s5 + $0x108] sm:$0xff]  ;;  %v3810_v29 = vld [vmem:[%s7505_s5 + $0x190] sm:$0xff]  ;;  %v3811_v57 = vld [vmem:[%s7505_s5 + $0x198] sm:$0xff] }
 0x2c3   : > { %v3366_v21 = vcombine.low %v3358_v41, %v3365_v2  ;;  %v3407_v25 = vrot.slane %v3400_v20, %v5742_v24  ;;  %v6809_v42 = vrot.slane %v3311_v22, %v5742_v24  ;;  %v3446_v19 = vrot.slane %v3160_v63, %v5742_v24  ;;  %v3794_v41 = vld [vmem:[%s7505_s5 + $0x110] sm:$0xff]  ;;  %v3795_v2 = vld [vmem:[%s7505_s5 + $0x118] sm:$0xff] }
 0x2c4   : > { %v3389_v51 = vcombine.low %v3381_v28, %v3388_v53  ;;  %v3414_v54 = vrot.slane %v3152_v44, %v5742_v24  ;;  %3423 = vrot.lane.b32.xlu0 %v6805_v1, %s7526_s15  ;;  %v3162_v18 = vcombine.high %v3152_v44, %v3152_v44  ;;  %v3458_v43 = vcombine.low %v3152_v44, %v3160_v63  ;;  %v3761_v63 = vld [vmem:[%s7505_s5 + $0x8] sm:$0xff]  ;;  %v3780_v28 = vld [vmem:[%s7505_s5 + $0xa0] sm:$0xff] }
 0x2c5   : > { %v3163_v4 = vcombine.high %v6764_v61, %v6764_v61  ;;  %v3447_v9 = vcombine.low %v3439_v8, %v3446_v19  ;;  %v3515_v55 = vcombine.low %v6764_v61, %v6768_v40  ;;  %v6828_v59 = vrot.slane %v3366_v21, %v5742_v24  ;;  %v3781_v8 = vld [vmem:[%s7505_s5 + $0xa8] sm:$0xff]  ;;  %v3812_v21 = vld [vmem:[%s7505_s5 + $0x1a0] sm:$0xff]  ;;  %v3767_v61 = vld [vmem:[%s7505_s5 + $0x38] sm:$0xff] }
 0x2c6   : > { %3323 = vrot.lane.b32.xlu1 %v6809_v42, %s7526_s15  ;;  %v3415_v31 = vcombine.low %v3407_v25, %v3414_v54  ;;  %v3465_v45 = vrot.slane %v3458_v43, %v5742_v24  ;;  %v3472_v52 = vrot.slane %v3162_v18, %v5742_v24  ;;  %v3185_v32 = vrot.slane %v3178_v0, %v5742_v24  ;;  %v3808_v0 = vld [vmem:[%s7505_s5 + $0x180] sm:$0xff]  ;;  %v3813_v25 = vld [vmem:[%s7505_s5 + $0x1a8] sm:$0xff] }
 0x2c7   : > { %v6840_v44 = vrot.slane %v3389_v51, %v5742_v24  ;;  %v3522_v20 = vrot.slane %v3515_v55, %v5742_v24  ;;  %v3529_v36 = vrot.slane %v3163_v4, %v5742_v24  ;;  %v3192_v5 = vrot.slane %v6728_v35, %v5742_v24  ;;  %v3764_v54 = vld [vmem:[%s7505_s5 + $0x20] sm:$0xff]  ;;  %v3765_v18 = vld [vmem:[%s7505_s5 + $0x28] sm:$0xff] }
 0x2c8   : > { %3481 = vrot.lane.b32.xlu0 %v6828_v59, %s7526_s15  ;;  %v3335_v35 = vrot.slane %v4778_v26, %v5742_v24  ;;  %v3342_v16 = vrot.slane %v6716_v30, %v5742_v24  ;;  %v5279_v23 = vpack.c.bf16 %v3777_v62, %v3776_v39  ;;  %v6872_v60 = vrot.slane %v3447_v9, %v5742_v24  ;;  %v3778_v30 = vld [vmem:[%s7505_s5 + $0x90] sm:$0xff] }
 0x2c9   : > { %v6874_v7 = vcombine.low %v3185_v32, %v3192_v5  ;;  %v3762_v26 = vld [vmem:[%s7505_s5 + $0x10] sm:$0xff]  ;;  %v3473_v47 = vcombine.low %v3465_v45, %v3472_v52  ;;  %v5281_v17 = vpack.c.bf16 %v3761_v63, %v3760_v13  ;;  %v5311_v10 = vpack.c.bf16 %v3809_v56, %v3808_v0  ;;  %v3796_v45 = vld [vmem:[%s7505_s5 + $0x120] sm:$0xff]  ;;  %v3797_v52 = vld [vmem:[%s7505_s5 + $0x128] sm:$0xff] }
 0x2ca   : > { %3483 = vrot.lane.b32.xlu1 %v6840_v44, %s7526_s15  ;;  %v6885_v33 = vcombine.low %v3335_v35, %v3342_v16  ;;  %5280 = vmatprep.subr.bf16.mxu0 %v5279_v23  ;;  %v6897_v37 = vrot.slane %v3415_v31, %v5742_v24  ;;  %v3530_v58 = vcombine.low %v3522_v20, %v3529_v36  ;;  %v3782_v9 = vld [vmem:[%s7505_s5 + $0xb0] sm:$0xff]  ;;  %v3783_v31 = vld [vmem:[%s7505_s5 + $0xb8] sm:$0xff]  ;;  %v3784_v0 = vld [vmem:[%s7505_s5 + $0xc0] sm:$0xff] }
 0x2cb   : > { %v5313_v22 = vpack.c.bf16 %v3793_v48, %v3792_v11  ;;  %5282 = vmatpush3.bf16.msra.mxu0 %v5281_v17  ;;  %v5283_v53 = vpack.c.bf16 %v3779_v38, %v3778_v30  ;;  %5312 = vmatprep.subr.bf16.mxu1 %v5311_v10  ;;  %v5285_v51 = vpack.c.bf16 %v3763_v14, %v3762_v26  ;;  %v3814_v20 = vld [vmem:[%s7505_s5 + $0x1b0] sm:$0xff]  ;;  %v3815_v36 = vld [vmem:[%s7505_s5 + $0x1b8] sm:$0xff]  ;;  %v3785_v56 = vld [vmem:[%s7505_s5 + $0xc8] sm:$0xff] }
 0x2cc   : > { %3538 = vrot.lane.b32.xlu0 %v6872_v60, %s7526_s15  ;;  %v5315_v19 = vpack.c.bf16 %v3811_v57, %v3810_v29  ;;  %v6928_v43 = vrot.slane %v3473_v47, %v5742_v24  ;;  %v5317_v4 = vpack.c.bf16 %v3795_v2, %v3794_v41  ;;  %v3537_v55 = vrot.slane %v3530_v58, %v5742_v24  ;;  %v3798_v16 = vld [vmem:[%s7505_s5 + $0x130] sm:$0xff]  ;;  %v3799_v23 = vld [vmem:[%s7505_s5 + $0x138] sm:$0xff]  ;;  %v3816_v48 = vld [vmem:[%s7505_s5 + $0x1c0] sm:$0xff] }
 0x2cd   : > { %5314 = vmatpush3.bf16.msra.mxu1 %v5313_v22  ;;  %5284 = vmatprep.subr.bf16.mxu0 %v5283_v53  ;;  %v5287_v39 = vpack.c.bf16 %v3781_v8, %v3780_v28  ;;  %v5319_v62 = vpack.c.bf16 %v3813_v25, %v3812_v21  ;;  %v5289_v32 = vpack.c.bf16 %v3765_v18, %v3764_v54  ;;  %v3817_v30 = vld [vmem:[%s7505_s5 + $0x1c8] sm:$0xff]  ;;  %v3768_v26 = vld [vmem:[%s7505_s5 + $0x40] sm:$0xff]  ;;  %v3786_v10 = vld [vmem:[%s7505_s5 + $0xd0] sm:$0xff] }
 0x2ce   : > { %3427 = vrot.lane.b32.xlu1 %v6897_v37, %s7526_s15  ;;  %5316 = vmatprep.subr.bf16.mxu1 %v5315_v19  ;;  %v3497_v13 = vrot.slane %v3490_v49, %v5742_v24  ;;  %v5291_v5 = vpack.c.bf16 %v3783_v31, %v3782_v9  ;;  %v3504_v63 = vrot.slane %v6768_v40, %v5742_v24  ;;  %v3769_v47 = vld [vmem:[%s7505_s5 + $0x48] sm:$0xff]  ;;  %v3787_v14 = vld [vmem:[%s7505_s5 + $0xd8] sm:$0xff]  ;;  %v3800_v57 = vld [vmem:[%s7505_s5 + $0x140] sm:$0xff] }
 0x2cf   : > { %5286 = vmatpush3.bf16.msra.mxu0 %v5285_v51  ;;  %v5321_v49 = vpack.c.bf16 %v3797_v52, %v3796_v45  ;;  %v5323_v35 = vpack.c.bf16 %v3815_v36, %v3814_v20  ;;  %v5293_v11 = vpack.c.bf16 %v3767_v61, %v3766_v15  ;;  %v5295_v38 = vpack.c.bf16 %v3785_v56, %v3784_v0  ;;  %v3801_v58 = vld [vmem:[%s7505_s5 + $0x148] sm:$0xff]  ;;  %v3818_v41 = vld [vmem:[%s7505_s5 + $0x1d0] sm:$0xff]  ;;  %v3819_v2 = vld [vmem:[%s7505_s5 + $0x1d8] sm:$0xff] }
 0x2d0   : > { %3485 = vrot.lane.b32.xlu0 %v6928_v43, %s7526_s15  ;;  %5288 = vmatprep.subr.bf16.mxu0 %v5287_v39  ;;  %v6970_v40 = vcombine.low %v3497_v13, %v3504_v63  ;;  %v5325_v17 = vpack.c.bf16 %v3799_v23, %v3798_v16  ;;  %v5327_v29 = vpack.c.bf16 %v3817_v30, %v3816_v48  ;;  %v3770_v53 = vld [vmem:[%s7505_s5 + $0x50] sm:$0xff]  ;;  %v3771_v8 = vld [vmem:[%s7505_s5 + $0x58] sm:$0xff]  ;;  %v3788_v25 = vld [vmem:[%s7505_s5 + $0xe0] sm:$0xff] }
 0x2d1   : > { %5318 = vmatpush3.bf16.msra.mxu1 %v5317_v4  ;;  %v5297_v22 = vpack.c.bf16 %v3769_v47, %v3768_v26  ;;  %v5299_v28 = vpack.c.bf16 %v3787_v14, %v3786_v10  ;;  %v5329_v21 = vpack.c.bf16 %v3801_v58, %v3800_v57  ;;  %v3789_v51 = vld [vmem:[%s7505_s5 + $0xe8] sm:$0xff]  ;;  %v5331_v19 = vpack.c.bf16 %v3819_v2, %v3818_v41  ;;  %v3802_v54 = vld [vmem:[%s7505_s5 + $0x150] sm:$0xff]  ;;  %v3803_v18 = vld [vmem:[%s7505_s5 + $0x158] sm:$0xff] }
 0x2d2   : > { %3540 = vrot.lane.b32.xlu1 %v3537_v55, %s7526_s15  ;;  %5320 = vmatprep.subr.bf16.mxu1 %v5319_v62  ;;  %v5301_v4 = vpack.c.bf16 %v3771_v8, %v3770_v53  ;;  %v3820_v9 = vld [vmem:[%s7505_s5 + $0x1e0] sm:$0xff]  ;;  %v3821_v31 = vld [vmem:[%s7505_s5 + $0x1e8] sm:$0xff]  ;;  %v5303_v55 = vpack.c.bf16 %v3789_v51, %v3788_v25  ;;  %v5333_v45 = vpack.c.bf16 %v3803_v18, %v3802_v54  ;;  %v3790_v52 = vld [vmem:[%s7505_s5 + $0xf0] sm:$0xff] }
 0x2d3   : > { %5290 = vmatpush3.bf16.msra.mxu0 %v5289_v32  ;;  %v3772_v39 = vld [vmem:[%s7505_s5 + $0x60] sm:$0xff]  ;;  %v3773_v62 = vld [vmem:[%s7505_s5 + $0x68] sm:$0xff]  ;;  %v3791_v32 = vld [vmem:[%s7505_s5 + $0xf8] sm:$0xff]  ;;  %v5335_v13 = vpack.c.bf16 %v3821_v31, %v3820_v9  ;;  %v3200_v14 = vrot.slane %v6874_v7, %v5742_v24  ;;  %v3566_v58 = vrot.slane %v3559_v46, %v5742_v24  ;;  %v3611_v53 = vrot.slane %v6840_v44, %v5742_v24 }
 0x2d4   : > { %5292 = vmatprep.subr.bf16.mxu0 %v5291_v5  ;;  %v3804_v20 = vld [vmem:[%s7505_s5 + $0x160] sm:$0xff]  ;;  %v3805_v36 = vld [vmem:[%s7505_s5 + $0x168] sm:$0xff]  ;;  %v5305_v5 = vpack.c.bf16 %v3773_v62, %v3772_v39  ;;  %v3822_v63 = vld [vmem:[%s7505_s5 + $0x1f0] sm:$0xff]  ;;  %v5307_v61 = vpack.c.bf16 %v3791_v32, %v3790_v52 }
 0x2d5   : > { %5322 = vmatpush3.bf16.msra.mxu1 %v5321_v49  ;;  %v3823_v15 = vld [vmem:[%s7505_s5 + $0x1f8] sm:$0xff]  ;;  %v3774_v49 = vld [vmem:[%s7505_s5 + $0x70] sm:$0xff]  ;;  %v5337_v56 = vpack.c.bf16 %v3805_v36, %v3804_v20  ;;  %v3825_v16 = vld [vmem:[%s7505_s5 + $0x208] sm:$0xff]  ;;  %v3725_v46 = vrot.slane %v3566_v58, %v5742_v24  ;;  %v3614_v25 = vcombine.high %v3611_v53, %v3611_v53 }
 0x2d6   : > { %5324 = vmatprep.subr.bf16.mxu1 %v5323_v35  ;;  %v3775_v0 = vld [vmem:[%s7505_s5 + $0x78] sm:$0xff]  ;;  %v3824_v35 = vld [vmem:[%s7505_s5 + $0x200] sm:$0xff]  ;;  %v5339_v23 = vpack.c.bf16 %v3823_v15, %v3822_v63 }
 0x2d7   : > { %5294 = vmatpush3.bf16.msra.mxu0 %v5293_v11  ;;  %v3806_v11 = vld [vmem:[%s7505_s5 + $0x170] sm:$0xff]  ;;  %v3807_v48 = vld [vmem:[%s7505_s5 + $0x178] sm:$0xff]  ;;  %v5309_v30 = vpack.c.bf16 %v3775_v0, %v3774_v49  ;;  %v3728_v31 = vcombine.high %v3725_v46, %v3725_v46 }
 0x2d8   : > { %5296 = vmatprep.subr.bf16.mxu0 %v5295_v38  ;;  %v7074_v38 = vpack.c.bf16 %v3825_v16, %v3824_v35  ;;  %v5341_v26 = vpack.c.bf16 %v3807_v48, %v3806_v11 }
 0x2d9   : > { %5326 = vmatpush3.bf16.msra.mxu1 %v5325_v17 }
 0x2da   : > { %5328 = vmatprep.subr.bf16.mxu1 %v5327_v29  ;;  %v3350_v29 = vrot.slane %v6885_v33, %v5742_v24 }
 0x2db   : > { %5298 = vmatpush3.bf16.msra.mxu0 %v5297_v22 }
 0x2dc   : > { %5300 = vmatprep.subr.bf16.mxu0 %v5299_v28 }
 0x2dd   : > { %5330 = vmatpush3.bf16.msra.mxu1 %v5329_v21 }
 0x2de   : > { %5332 = vmatprep.subr.bf16.mxu1 %v5331_v19  ;;  %v3668_v19 = vrot.slane %v6928_v43, %v5742_v24 }
 0x2df   : > { %5302 = vmatpush3.bf16.msra.mxu0 %v5301_v4 }
 0x2e0   : > { %5304 = vmatprep.subr.bf16.mxu0 %v5303_v55  ;;  %v3671_v62 = vcombine.high %v3668_v19, %v3668_v19  ;;  %v3692_v49 = vrot.slane %v3668_v19, %v5742_v24 }
 0x2e1   : > { %5334 = vmatpush3.bf16.msra.mxu1 %v5333_v45 }
 0x2e2   : > { %5336 = vmatprep.subr.bf16.mxu1 %v5335_v13 }
 0x2e3   : > { %5306 = vmatpush3.bf16.msra.mxu0 %v5305_v5  ;;  %v3756_v5 = vrot.slane %v3728_v31, %v5742_v24 }
 0x2e4   : > { %5308 = vmatprep.subr.bf16.mxu0 %v5307_v61  ;;  %v3635_v61 = vrot.slane %v3611_v53, %v5742_v24 }
 0x2e5   : > { %5338 = vmatpush3.bf16.msra.mxu1 %v5337_v56  ;;  %v3699_v56 = vrot.slane %v3671_v62, %v5742_v24 }
 0x2e6   : > { %5340 = vmatprep.subr.bf16.mxu1 %v5339_v23 }
 0x2e7   : > { %5310 = vmatpush3.bf16.msra.mxu0 %v5309_v30 }
 0x2e8   : > { %5344 = vmatprep.subr.bf16.mxu0 %v7074_v38 }
 0x2e9   : > { %5342 = vmatpush3.bf16.msra.mxu1 %v5341_v26 }
 0x32f   : > { %v3426_v47 = vpop.permute.xlu1 %3425 }
 0x330   : > { %v3571_v51 = vsel %vm1736_vm3, %v6828_v59, %v3426_v47  ;;  %v3642_v59 = vrot.slane %v3614_v25, %v5742_v24 }
 0x331   : > { %v3322_v17 = vpop.permute.xlu0 %3321 }
 0x332   : > { %v3568_v7 = vsel %vm1736_vm3, %v6805_v1, %v3322_v17  ;;  %v4782_v23 = vcombine.low %v3635_v61, %v3642_v59 }
 0x333   : > { %v3646_v54 = vcombine.low %v3568_v7, %v3571_v51 }
 0x334   : > { %v3320_v10 = vpop.permute.xlu1 %3319 }
 0x335   : > { %v3567_v22 = vsel %vm1736_vm3, %v3200_v14, %v3320_v10  ;;  %v3654_v45 = vrot.slane %v3646_v54, %v5742_v24 }
 0x336   : > { %v3424_v57 = vpop.permute.xlu0 %3423 }
 0x337   : > { %v3570_v41 = vsel %vm1736_vm3, %v3350_v29, %v3424_v57 }
 0x338   : > { %v3324_v2 = vpop.permute.xlu1 %3323  ;;  %v3589_v28 = vcombine.low %v3567_v22, %v3570_v41 }
 0x339   : > { %v3569_v33 = vsel %vm1736_vm3, %v6760_v34, %v3324_v2 }
 0x33a   : > { %v3482_v8 = vpop.permute.xlu0 %3481  ;;  %v3597_v1 = vrot.slane %v3589_v28, %v5742_v24  ;;  %v3860_v28 = vrot.slane %v4782_v23, %v5742_v24 }
 0x33b   : > { %v3573_v12 = vsel %vm1736_vm3, %v6774_v27, %v3482_v8 }
 0x33c   : > { %v3484_v50 = vpop.permute.xlu1 %3483  ;;  %v3590_v21 = vcombine.low %v3573_v12, %v3569_v33 }
 0x33d   : > { %v3574_v27 = vsel %vm1736_vm3, %v6809_v42, %v3484_v50  ;;  %v3512_v42 = vrot.slane %v6970_v40, %v5742_v24  ;;  %v7121_v40 = vrot.slane %v3725_v46, %v5742_v24 }
 0x33e   : > { %v3604_v18 = vrot.slane %v3590_v21, %v5742_v24  ;;  %v3539_v34 = vpop.permute.xlu0 %3538 }
 0x33f   : > { %v3576_v4 = vsel %vm1736_vm3, %v6897_v37, %v3539_v34  ;;  %v4788_v30 = vcombine.low %v7121_v40, %v3756_v5 }
 0x340   : > { %v3428_v9 = vpop.permute.xlu1 %3427  ;;  %v3612_v55 = vcombine.low %v3597_v1, %v3604_v18  ;;  %v3647_v39 = vcombine.low %v3574_v27, %v3576_v4  ;;  %v3613_v13 = vcombine.high %v3597_v1, %v3604_v18 }
 0x341   : > { %v3572_v43 = vsel %vm1736_vm3, %v6840_v44, %v3428_v9 }
 0x342   : > { %v3661_v52 = vrot.slane %v3647_v39, %v5742_v24  ;;  %v3486_v32 = vpop.permute.xlu0 %3485  ;;  %v3621_v37 = vrot.slane %v3612_v55, %v5742_v24  ;;  %v3703_v15 = vcombine.low %v3569_v33, %v3572_v43  ;;  %v3628_v11 = vrot.slane %v3613_v13, %v5742_v24  ;;  %v3827_v13 = vld [vmem:[%s7505_s5 + $0x218] sm:$0xff] }
 0x343   : > { %v3575_v20 = vsel %vm1736_vm3, %v6872_v60, %v3486_v32  ;;  %v3902_v33 = vrot.slane %v4788_v30, %v5742_v24  ;;  %v4277_v30 = vld [vmem:[%s7507_s7 + $0x80] sm:$0xff] }
 0x344   : > { %v3541_v36 = vpop.permute.xlu1 %3540  ;;  %v3669_v63 = vcombine.low %v3654_v45, %v3661_v52  ;;  %v3670_v44 = vcombine.high %v3654_v45, %v3661_v52  ;;  %v3644_v48 = vcombine.high %v3621_v37, %v3635_v61  ;;  %v3711_v17 = vrot.slane %v3703_v15, %v5742_v24 }
 0x345   : > { %v3577_v0 = vsel %vm1736_vm3, %v3512_v42, %v3541_v36  ;;  %v4781_v41 = vcombine.low %v3621_v37, %v3628_v11  ;;  %v3826_v42 = vld [vmem:[%s7505_s5 + $0x210] sm:$0xff] }
 0x346   : > { %v3678_v35 = vrot.slane %v3669_v63, %v5742_v24  ;;  %v3685_v60 = vrot.slane %v3670_v44, %v5742_v24  ;;  %v3704_v16 = vcombine.low %v3575_v20, %v3577_v0  ;;  %v5347_v44 = vpack.c.bf16 %v3827_v13, %v3826_v42  ;;  %v4316_v42 = vld [vmem:[%s7507_s7 + $0x1b8] sm:$0xff] }
 0x347   : > { %v3853_v54 = vrot.slane %v4781_v41, %v5742_v24 }
 0x348   : > { %v3700_v26 = vcombine.low %v3678_v35, %v3692_v49  ;;  %v3702_v47 = vcombine.low %v3685_v60, %v3699_v56  ;;  %v3718_v10 = vrot.slane %v3704_v16, %v5742_v24  ;;  %v3701_v14 = vcombine.high %v3678_v35, %v3692_v49  ;;  %v3831_v16 = vld [vmem:[%s7505_s5 + $0x238] sm:$0xff] }
 0x349   : > { %v4783_v29 = vcombine.low %v3644_v48, %v3678_v35 }
 0x34a   : > { %v4784_v57 = vcombine.high %v3635_v61, %v3700_v26  ;;  %v4786_v58 = vcombine.high %v3702_v47, %v3692_v49  ;;  %v3726_v22 = vcombine.low %v3711_v17, %v3718_v10  ;;  %v3727_v2 = vcombine.high %v3711_v17, %v3718_v10  ;;  %v3828_v61 = vld [vmem:[%s7505_s5 + $0x220] sm:$0xff]  ;;  %v3829_v49 = vld [vmem:[%s7505_s5 + $0x228] sm:$0xff] }
 0x34b   : > { %v4785_v12 = vcombine.low %v3685_v60, %v3701_v14  ;;  %v3867_v46 = vrot.slane %v4783_v29, %v5742_v24  ;;  %v5351_v35 = vpack.c.bf16 %v3829_v49, %v3828_v61  ;;  %v3830_v60 = vld [vmem:[%s7505_s5 + $0x230] sm:$0xff]  ;;  %v4278_v26 = vld [vmem:[%s7507_s7 + $0x88] sm:$0xff] }
 0x34c   : > { %v3735_v53 = vrot.slane %v3726_v22, %v5742_v24  ;;  %v3874_v8 = vrot.slane %v4784_v57, %v5742_v24  ;;  %v3888_v7 = vrot.slane %v4786_v58, %v5742_v24  ;;  %v3742_v50 = vrot.slane %v3727_v2, %v5742_v24  ;;  %v4262_v17 = vld [vmem:[%s7507_s7 + $0x8] sm:$0xff]  ;;  %v4293_v57 = vld [vmem:[%s7507_s7 + $0x100] sm:$0xff]  ;;  %v4279_v22 = vld [vmem:[%s7507_s7 + $0x90] sm:$0xff] }
 0x34d   : > { %v3881_v27 = vrot.slane %v4785_v12, %v5742_v24  ;;  %v3903_v9 = vcombine.low %v3853_v54, %v3867_v46  ;;  %v3904_v31 = vcombine.high %v3853_v54, %v3867_v46  ;;  %v5355_v23 = vpack.c.bf16 %v3831_v16, %v3830_v60  ;;  %v4310_v10 = vld [vmem:[%s7507_s7 + $0x188] sm:$0xff]  ;;  %v4280_v2 = vld [vmem:[%s7507_s7 + $0x98] sm:$0xff] }
 0x34e   : > { %v3758_v21 = vcombine.high %v3735_v53, %v7121_v40  ;;  %v3905_v25 = vcombine.low %v3860_v28, %v3874_v8  ;;  %v3908_v51 = vcombine.low %v3888_v7, %v3902_v33  ;;  %v4787_v19 = vcombine.low %v3735_v53, %v3742_v50  ;;  %v4294_v58 = vld [vmem:[%s7507_s7 + $0x108] sm:$0xff]  ;;  %v4263_v28 = vld [vmem:[%s7507_s7 + $0x10] sm:$0xff]  ;;  %v4264_v53 = vld [vmem:[%s7507_s7 + $0x18] sm:$0xff] }
 0x34f   : > { %v3929_v62 = vrot.slane %v3904_v31, %v5742_v24  ;;  %v3915_v52 = vrot.slane %v3903_v9, %v5742_v24  ;;  %v5359_v47 = vpack.c.bf16 %v4278_v26, %v4277_v30  ;;  %v5393_v41 = vpack.c.bf16 %v4294_v58, %v4293_v57  ;;  %v4311_v33 = vld [vmem:[%s7507_s7 + $0x190] sm:$0xff]  ;;  %v4312_v12 = vld [vmem:[%s7507_s7 + $0x198] sm:$0xff]  ;;  %v4298_v9 = vld [vmem:[%s7507_s7 + $0x128] sm:$0xff] }
 0x350   : > { %v3963_v1 = vrot.slane %v3758_v21, %v5742_v24  ;;  %v3922_v18 = vrot.slane %v3905_v25, %v5742_v24  ;;  %v3943_v34 = vrot.slane %v3908_v51, %v5742_v24  ;;  %v3895_v4 = vrot.slane %v4787_v19, %v5742_v24  ;;  %v4295_v50 = vld [vmem:[%s7507_s7 + $0x110] sm:$0xff]  ;;  %v4296_v21 = vld [vmem:[%s7507_s7 + $0x118] sm:$0xff]  ;;  %v4281_v25 = vld [vmem:[%s7507_s7 + $0xa0] sm:$0xff] }
 0x351   : > { %5360 = vmatprep.subr.bf16.mxu1 %v5359_v47  ;;  %v5363_v8 = vpack.c.bf16 %v4280_v2, %v4279_v22  ;;  %v5365_v7 = vpack.c.bf16 %v4264_v53, %v4263_v28  ;;  %v5395_v46 = vpack.c.bf16 %v4312_v12, %v4311_v33  ;;  %v4282_v51 = vld [vmem:[%s7507_s7 + $0xa8] sm:$0xff]  ;;  %v5397_v19 = vpack.c.bf16 %v4296_v21, %v4295_v50  ;;  %v4271_v47 = vld [vmem:[%s7507_s7 + $0x50] sm:$0xff]  ;;  %v4321_v58 = vld [vmem:[%s7507_s7 + $0x1e0] sm:$0xff] }
 0x352   : > { %v3971_v55 = vcombine.high %v3963_v1, %v3963_v1  ;;  %v3953_v39 = vcombine.low %v3922_v18, %v3943_v34  ;;  %v3906_v59 = vcombine.low %v3881_v27, %v3895_v4  ;;  %v3907_v43 = vcombine.high %v3881_v27, %v3895_v4  ;;  %v4266_v18 = vld [vmem:[%s7507_s7 + $0x28] sm:$0xff]  ;;  %v4313_v34 = vld [vmem:[%s7507_s7 + $0x1a0] sm:$0xff]  ;;  %v4291_v50 = vld [vmem:[%s7507_s7 + $0xf0] sm:$0xff] }
 0x353   : > { %v3978_v15 = vrot.slane %v3963_v1, %v5742_v24  ;;  %v5367_v54 = vpack.c.bf16 %v4282_v51, %v4281_v25  ;;  %v4265_v1 = vld [vmem:[%s7507_s7 + $0x20] sm:$0xff]  ;;  %v4314_v27 = vld [vmem:[%s7507_s7 + $0x1a8] sm:$0xff] }
 0x354   : > { %v3950_v45 = vrot.slane %v3907_v43, %v5742_v24  ;;  %v3936_v32 = vrot.slane %v3906_v59, %v5742_v24  ;;  %v3992_v37 = vrot.slane %v3971_v55, %v5742_v24  ;;  %v4297_v4 = vld [vmem:[%s7507_s7 + $0x120] sm:$0xff]  ;;  %v5369_v31 = vpack.c.bf16 %v4266_v18, %v4265_v1  ;;  %v4284_v59 = vld [vmem:[%s7507_s7 + $0xb8] sm:$0xff]  ;;  %v4267_v43 = vld [vmem:[%s7507_s7 + $0x30] sm:$0xff] }
 0x355   : > { %v3993_v56 = vcombine.high %v3978_v15, %v3978_v15  ;;  %v5399_v55 = vpack.c.bf16 %v4314_v27, %v4313_v34  ;;  %v4302_v16 = vld [vmem:[%s7507_s7 + $0x148] sm:$0xff]  ;;  %v4273_v53 = vld [vmem:[%s7507_s7 + $0x60] sm:$0xff] }
 0x356   : > { %v3954_v20 = vcombine.low %v3929_v62, %v3950_v45  ;;  %v3955_v36 = vcombine.high %v3929_v62, %v3950_v45  ;;  %v3951_v5 = vcombine.low %v3915_v52, %v3936_v32  ;;  %v3952_v63 = vcombine.high %v3915_v52, %v3936_v32  ;;  %v4268_v52 = vld [vmem:[%s7507_s7 + $0x38] sm:$0xff]  ;;  %v4315_v32 = vld [vmem:[%s7507_s7 + $0x1b0] sm:$0xff]  ;;  %v4290_v57 = vld [vmem:[%s7507_s7 + $0xe8] sm:$0xff] }
 0x357   : > { %v3994_v0 = vcombine.high %v3992_v37, %v3992_v37  ;;  %v5401_v62 = vpack.c.bf16 %v4298_v9, %v4297_v4  ;;  %v5403_v13 = vpack.c.bf16 %v4316_v42, %v4315_v32  ;;  %v4322_v22 = vld [vmem:[%s7507_s7 + $0x1e8] sm:$0xff]  ;;  %v4780_v1 = vld [vmem:[%s7506_s6] ss:$0 sm:$0xff]  ;;  %v4275_v42 = vld [vmem:[%s7507_s7 + $0x70] sm:$0xff] }
 0x358   : > { %4071 = vmatprep.mubr.f32.mxu0 %v3954_v20  ;;  %4146 = vmatprep.mubr.f32.mxu1 %v3955_v36  ;;  %v4300_v20 = vld [vmem:[%s7507_s7 + $0x138] sm:$0xff]  ;;  %v4285_v36 = vld [vmem:[%s7507_s7 + $0xc0] sm:$0xff]  ;;  %v5415_v33 = vpack.c.bf16 %v4322_v22, %v4321_v58  ;;  %v4306_v12 = vld [vmem:[%s7507_s7 + $0x168] sm:$0xff] }
 0x359   : > { %4072 = vmatmul.mubr.f32.vlgmr.msra.gmra.mrb[22].mxu0 %v3951_v5  ;;  %4147 = vmatmul.mubr.f32.vlgmr.msra.gmra.mrb[12].mxu1 %v3952_v63  ;;  %v4286_v5 = vld [vmem:[%s7507_s7 + $0xc8] sm:$0xff]  ;;  %v5373_v63 = vpack.c.bf16 %v4268_v52, %v4267_v43 }
 0x35a   : > { %5346 = vmatpush3.bf16.msra.mxu0 %v7074_v38  ;;  %4076 = vmatprep.mubr.f32.mxu0 %v3992_v37  ;;  %v4789_v38 = vcombine.high %v7121_v40, %v7121_v40  ;;  %v4261_v40 = vld [vmem:[%s7507_s7] sm:$0xff]  ;;  %v4299_v37 = vld [vmem:[%s7507_s7 + $0x130] sm:$0xff]  ;;  %v5375_v49 = vpack.c.bf16 %v4286_v5, %v4285_v36  ;;  %v4324_v36 = vld [vmem:[%s7507_s7 + $0x1f8] sm:$0xff] }
 0x35b   : > { %4151 = vmatprep.mubr.f32.mxu1 %v3994_v0  ;;  %5348 = vmatprep.subr.bf16.mxu0 %v5347_v44  ;;  %v5361_v14 = vpack.c.bf16 %v4262_v17, %v4261_v40  ;;  %v5405_v61 = vpack.c.bf16 %v4300_v20, %v4299_v37  ;;  %v4269_v0 = vld [vmem:[%s7507_s7 + $0x40] sm:$0xff]  ;;  %v4272_v17 = vld [vmem:[%s7507_s7 + $0x58] sm:$0xff]  ;;  %v4323_v37 = vld [vmem:[%s7507_s7 + $0x1f0] sm:$0xff] }
 0x35c   : > { %v3970_v11 = vrot.slane %v4789_v38, %v5742_v24  ;;  %v4287_v38 = vld [vmem:[%s7507_s7 + $0xd0] sm:$0xff] }
 0x35d   : > { %4077 = vmatmul.mubr.f32.gmra.mrb[24].mxu0 %v3978_v15  ;;  %4152 = vmatmul.mubr.f32.gmra.mrb[14].mxu1 %v3993_v56  ;;  %v4318_v15 = vld [vmem:[%s7507_s7 + $0x1c8] sm:$0xff]  ;;  %v4307_v5 = vld [vmem:[%s7507_s7 + $0x170] sm:$0xff] }
 0x35e   : > { %5350 = vmatpush3.bf16.msra.mxu0 %v5347_v44  ;;  %5152 = vmatprep.mubr.msk.f32.mxu0 %vm1736_vm3, %v3953_v39  ;;  %v3985_v48 = vrot.slane %v3970_v11, %v5742_v24  ;;  %v4309_v24 = vld [vmem:[%s7507_s7 + $0x180] sm:$0xff]  ;;  %v4283_v39 = vld [vmem:[%s7507_s7 + $0xb0] sm:$0xff]  ;;  %v4270_v56 = vld [vmem:[%s7507_s7 + $0x48] sm:$0xff] }
 0x35f   : > { %5352 = vmatprep.subr.bf16.mxu0 %v5351_v35  ;;  %v5391_v29 = vpack.c.bf16 %v4310_v10, %v4309_v24  ;;  %5362 = vmatpush3.bf16.msra.mxu1 %v5361_v14  ;;  %v5371_v45 = vpack.c.bf16 %v4284_v59, %v4283_v39  ;;  %v4317_v44 = vld [vmem:[%s7507_s7 + $0x1c0] sm:$0xff]  ;;  %v4319_v11 = vld [vmem:[%s7507_s7 + $0x1d0] sm:$0xff]  ;;  %v5377_v30 = vpack.c.bf16 %v4270_v56, %v4269_v0  ;;  %v4304_v14 = vld [vmem:[%s7507_s7 + $0x158] sm:$0xff] }
 0x360   : > { %5364 = vmatprep.subr.bf16.mxu1 %v5363_v8  ;;  %v5407_v60 = vpack.c.bf16 %v4318_v15, %v4317_v44  ;;  %v4303_v24 = vld [vmem:[%s7507_s7 + $0x150] sm:$0xff]  ;;  %v4274_v8 = vld [vmem:[%s7507_s7 + $0x68] sm:$0xff]  ;;  %v5419_v44 = vpack.c.bf16 %v4324_v36, %v4323_v37 }
 0x361   : > { %v5413_v2 = vpack.c.bf16 %v4304_v14, %v4303_v24  ;;  %v5385_v21 = vpack.c.bf16 %v4274_v8, %v4273_v53  ;;  %v4327_v8 = vld [vmem:[%s7507_s7 + $0x210] sm:$0xff] }
 0x362   : > { %5354 = vmatpush3.bf16.msra.mxu0 %v5351_v35  ;;  %v4301_v35 = vld [vmem:[%s7507_s7 + $0x140] sm:$0xff] }
 0x363   : > { %5356 = vmatprep.subr.bf16.mxu0 %v5355_v23  ;;  %5366 = vmatpush3.bf16.msra.mxu1 %v5365_v7  ;;  %v5409_v26 = vpack.c.bf16 %v4302_v16, %v4301_v35  ;;  %v4305_v7 = vld [vmem:[%s7507_s7 + $0x160] sm:$0xff] }
 0x364   : > { %5368 = vmatprep.subr.bf16.mxu1 %v5367_v54  ;;  %v5417_v25 = vpack.c.bf16 %v4306_v12, %v4305_v7  ;;  %v4328_v7 = vld [vmem:[%s7507_s7 + $0x218] sm:$0xff]  ;;  %v4329_v12 = vld [vmem:[%s7507_s7 + $0x220] sm:$0xff] }
 0x366   : > { %5358 = vmatpush3.bf16.msra.mxu0 %v5355_v23  ;;  %v4288_v23 = vld [vmem:[%s7507_s7 + $0xd8] sm:$0xff] }
 0x367   : > { %5392 = vmatprep.subr.bf16.mxu0 %v5391_v29  ;;  %5370 = vmatpush3.bf16.msra.mxu1 %v5369_v31  ;;  %v5379_v40 = vpack.c.bf16 %v4288_v23, %v4287_v38  ;;  %v4289_v29 = vld [vmem:[%s7507_s7 + $0xe0] sm:$0xff] }
 0x368   : > { %5372 = vmatprep.subr.bf16.mxu1 %v5371_v45  ;;  %v5383_v28 = vpack.c.bf16 %v4290_v57, %v4289_v29 }
 0x369   : > { %5153 = vmatmul.mubr.msk.f32.vlgmr.msra.gmra.mrb[26].mxu0 %vm1736_vm3, %v3985_v48  ;;  %v4320_v48 = vld [vmem:[%s7507_s7 + $0x1d8] sm:$0xff] }
 0x36a   : > { %5394 = vmatpush3.bf16.msra.mxu0 %v5393_v41  ;;  %v5411_v10 = vpack.c.bf16 %v4320_v48, %v4319_v11  ;;  %v5381_v41 = vpack.c.bf16 %v4272_v17, %v4271_v47 }
 0x36b   : > { %5396 = vmatprep.subr.bf16.mxu0 %v5395_v46  ;;  %5374 = vmatpush3.bf16.msra.mxu1 %v5373_v63  ;;  %v4292_v46 = vld [vmem:[%s7507_s7 + $0xf8] sm:$0xff] }
 0x36c   : > { %5376 = vmatprep.subr.bf16.mxu1 %v5375_v49  ;;  %v5387_v51 = vpack.c.bf16 %v4292_v46, %v4291_v50  ;;  %v4308_v63 = vld [vmem:[%s7507_s7 + $0x178] sm:$0xff]  ;;  %v4330_v50 = vld [vmem:[%s7507_s7 + $0x228] sm:$0xff] }
 0x36d   : > { %v5421_v15 = vpack.c.bf16 %v4308_v63, %v4307_v5  ;;  %v5430_v46 = vpack.c.bf16 %v4330_v50, %v4329_v12 }
 0x36e   : > { %5398 = vmatpush3.bf16.msra.mxu0 %v5397_v19 }
 0x36f   : > { %5400 = vmatprep.subr.bf16.mxu0 %v5399_v55  ;;  %5378 = vmatpush3.bf16.msra.mxu1 %v5377_v30  ;;  %v4325_v30 = vld [vmem:[%s7507_s7 + $0x200] sm:$0xff] }
 0x370   : > { %5380 = vmatprep.subr.bf16.mxu1 %v5379_v40 }
 0x372   : > { %5402 = vmatpush3.bf16.msra.mxu0 %v5401_v62 }
 0x373   : > { %5404 = vmatprep.subr.bf16.mxu0 %v5403_v13  ;;  %5382 = vmatpush3.bf16.msra.mxu1 %v5381_v41  ;;  %v4276_v13 = vld [vmem:[%s7507_s7 + $0x78] sm:$0xff] }
 0x374   : > { %5384 = vmatprep.subr.bf16.mxu1 %v5383_v28  ;;  %v5389_v20 = vpack.c.bf16 %v4276_v13, %v4275_v42 }
 0x376   : > { %5406 = vmatpush3.bf16.msra.mxu0 %v5405_v61 }
 0x377   : > { %5408 = vmatprep.subr.bf16.mxu0 %v5407_v60  ;;  %5386 = vmatpush3.bf16.msra.mxu1 %v5385_v21  ;;  %v4331_v21 = vld [vmem:[%s7507_s7 + $0x230] sm:$0xff] }
 0x378   : > { %5388 = vmatprep.subr.bf16.mxu1 %v5387_v51 }
 0x37a   : > { %5410 = vmatpush3.bf16.msra.mxu0 %v5409_v26  ;;  %v4326_v26 = vld [vmem:[%s7507_s7 + $0x208] sm:$0xff] }
 0x37b   : > { %5412 = vmatprep.subr.bf16.mxu0 %v5411_v10  ;;  %5390 = vmatpush3.bf16.msra.mxu1 %v5389_v20  ;;  %v5424_v22 = vpack.c.bf16 %v4326_v26, %v4325_v30  ;;  %v4645_v26 = vld [vmem:[%s7511_s11] sm:$0x1] }
 0x37c   : > { %5423 = vmatprep.subr.bf16.mxu1 %v5568_v3 }
 0x37e   : > { %5414 = vmatpush3.bf16.msra.mxu0 %v5413_v2 }
 0x37f   : > { %5416 = vmatprep.subr.bf16.mxu0 %v5415_v33  ;;  %v5427_v33 = vpack.c.bf16 %v4328_v7, %v4327_v8 }
 0x382   : > { %5418 = vmatpush3.bf16.msra.mxu0 %v5417_v25  ;;  %v4332_v25 = vld [vmem:[%s7507_s7 + $0x238] sm:$0xff] }
 0x383   : > { %5420 = vmatprep.subr.bf16.mxu0 %v5419_v44  ;;  %v5433_v51 = vpack.c.bf16 %v4332_v25, %v4331_v21  ;;  %v4556_v44 = vld [vmem:[%s7510_s10] sm:$0x1] }
 0x386   : > { %5422 = vmatpush3.bf16.msra.mxu0 %v5421_v15 }
 0x387   : > { %5435 = vmatprep.subr.bf16.mxu0 %v5568_v3 }
 0x42c   : > { %v4941_v19 = vpop.f32.mrb[22].mxu0  ;;  %v4979_v54 = vpop.f32.mrb[12].mxu1 }
 0x42d   : > { %v4942_v18 = vpop.f32.mrb[23].mxu0  ;;  %v4980_v34 = vpop.f32.mrb[13].mxu1 }
 0x42e   : > { %v4943_v27 = vadd.f32 %v4942_v18, %v4941_v19  ;;  %v4981_v4 = vadd.f32 %v4980_v34, %v4979_v54  ;;  %v4549_v54 = vld [vmem:[%s7509_s9 + $0x8] sm:$0xff]  ;;  %v4551_v34 = vld [vmem:[%s7509_s9 + $0x18] sm:$0xff] }
 0x430   : > { %v4074_v9 = vadd.f32 %v4943_v27, %v4780_v1  ;;  %v4944_v31 = vpop.f32.mrb[24].mxu0  ;;  %v4982_v55 = vpop.f32.mrb[14].mxu1 }
 0x431   : > { %v4945_v39 = vpop.f32.mrb[25].mxu0  ;;  %v4983_v59 = vpop.f32.mrb[15].mxu1 }
 0x432   : > { %v4946_v43 = vadd.f32 %v4945_v39, %v4944_v31  ;;  %v4984_v62 = vadd.f32 %v4983_v59, %v4982_v55  ;;  %v4149_v45 = vadd.f32 %v4981_v4, %v4074_v9  ;;  %v4552_v4 = vld [vmem:[%s7509_s9 + $0x20] sm:$0xff]  ;;  %v4553_v9 = vld [vmem:[%s7509_s9 + $0x28] sm:$0xff]  ;;  %v4554_v55 = vld [vmem:[%s7509_s9 + $0x30] sm:$0xff] }
 0x433   : > { %v5442_v31 = vpack.c.bf16 %v4553_v9, %v4552_v4  ;;  %v4555_v39 = vld [vmem:[%s7509_s9 + $0x38] sm:$0xff] }
 0x434   : > { %v4079_v52 = vadd.f32 %v4946_v43, %v4780_v1  ;;  %v4550_v1 = vld [vmem:[%s7509_s9 + $0x10] sm:$0xff]  ;;  %v5445_v59 = vpack.c.bf16 %v4555_v39, %v4554_v55 }
 0x435   : > { %v5439_v27 = vpack.c.bf16 %v4551_v34, %v4550_v1 }
 0x436   : > { %v4154_v32 = vadd.f32 %v4984_v62, %v4079_v52 }
 0x43c   : > { %v5154_v61 = vpop.f32.mrb[26].mxu0 }
 0x43d   : > { %v4229_v49 = vadd.f32 %v5154_v61, %v4154_v32  ;;  %v4223_v0 = vpop.f32.mrb[27].mxu0 }
 0x43e   : > { %v4224_v56 = vadd.f32 %v4223_v0, %v4149_v45  ;;  %v4333_v45 = vld [vmem:[%s7508_s8] sm:$0x1] }
 0x43f   : > { %v4233_v19 = vmax.f32 %v4229_v49, 0.0 }
 0x440   : > { %v4232_v35 = vmax.f32 %v4224_v56, 0.0 }
 0x442   : > { %v4247_v60 = vrot.slane %v4232_v35, 5  ;;  %v4253_v16 = vrot.slane %v4232_v35, 7  ;;  %v4235_v38 = vrot.slane %v4232_v35, 1  ;;  %v4241_v23 = vrot.slane %v4232_v35, 3 }
 0x443   : > { %v4239_v17 = vrot.slane %v4232_v35, 2  ;;  %v4251_v24 = vrot.slane %v4232_v35, 6  ;;  %v4245_v10 = vrot.slane %v4232_v35, 4 }
 0x444   : > { %v5497_v11 = vpack.i.bf16 %v4247_v60, %v4253_v16  ;;  %v5492_v48 = vpack.i.bf16 %v4235_v38, %v4241_v23 }
 0x446   : > { %5498 = vrot.lane.b32.xlu1 %v5497_v11, %s7526_s15  ;;  %5493 = vrot.lane.b32.xlu0 %v5492_v48, %s7526_s15 }
 0x4b8   : > { %v5499_v40 = vpop.permute.xlu1 %5498  ;;  %v5494_v47 = vpop.permute.xlu0 %5493 }
 0x4b9   : > { %v5501_v14 = vunpack.i.h.bf16 %v5499_v40  ;;  %v5500_v29 = vunpack.i.l.bf16 %v5499_v40  ;;  %v5496_v57 = vunpack.i.h.bf16 %v5494_v47  ;;  %v5495_v58 = vunpack.i.l.bf16 %v5494_v47  ;;  %v4647_v47 = vld [vmem:[%s7512_s12] sm:$0x1] }
 0x4bb   : > { %v4258_v41 = vsel %vm1736_vm3, %v4239_v17, %v5495_v58  ;;  %v4260_v2 = vsel %vm1736_vm3, %v4251_v24, %v5500_v29  ;;  %v4257_v28 = vsel %vm1736_vm3, %v4232_v35, %v5496_v57  ;;  %v4259_v53 = vsel %vm1736_vm3, %v4245_v10, %v5501_v14 }
 0x4bc   : > { %4401 = vmatprep.mubr.f32.mxu1 %v4258_v41  ;;  %4471 = vmatprep.mubr.f32.mxu0 %v4260_v2 }
 0x4bd   : > { %4402 = vmatmul.mubr.f32.vlgmr.msra.gmra.mrb[16].mxu1 %v4257_v28  ;;  %4472 = vmatmul.mubr.f32.vlgmr.msra.gmra.mrb[28].mxu0 %v4259_v53 }
 0x4be   : > { %5425 = vmatpush3.bf16.msra.mxu1 %v5424_v22  ;;  %5171 = vmatprep.mubr.msk.f32.mxu1 %vm5569_vm0, %v5570_v6 }
 0x4bf   : > { %5426 = vmatprep.subr.bf16.mxu1 %v5568_v3  ;;  %5190 = vmatprep.mubr.msk.f32.mxu0 %vm5569_vm0, %v5570_v6  ;;  %v4548_v6 = vld [vmem:[%s7509_s9] sm:$0xff] }
 0x4c0   : > { %v5436_v18 = vpack.c.bf16 %v4549_v54, %v4548_v6 }
 0x4c2   : > { %5428 = vmatpush3.bf16.msra.mxu1 %v5427_v33  ;;  %5437 = vmatpush3.bf16.msra.mxu0 %v5436_v18 }
 0x4c3   : > { %5429 = vmatprep.subr.bf16.mxu1 %v5568_v3  ;;  %5438 = vmatprep.subr.bf16.mxu0 %v5568_v3 }
 0x4c6   : > { %5431 = vmatpush3.bf16.msra.mxu1 %v5430_v46  ;;  %5440 = vmatpush3.bf16.msra.mxu0 %v5439_v27 }
 0x4c7   : > { %5432 = vmatprep.subr.bf16.mxu1 %v5568_v3  ;;  %5441 = vmatprep.subr.bf16.mxu0 %v5568_v3 }
 0x4ca   : > { %5434 = vmatpush3.bf16.msra.mxu1 %v5433_v51  ;;  %5443 = vmatpush3.bf16.msra.mxu0 %v5442_v31 }
 0x4cb   : > { %5444 = vmatprep.subr.bf16.mxu0 %v5568_v3 }
 0x4cd   : > { %5172 = vmatmul.mubr.msk.f32.vlgmr.msra.gmra.mrb[18].mxu1 %vm1736_vm3, %v4233_v19 }
 0x4ce   : > { %5446 = vmatpush3.bf16.msra.mxu0 %v5445_v59 }
 0x590   : > { %v5027_v43 = vpop.f32.mrb[16].mxu1  ;;  %v5062_v62 = vpop.f32.mrb[28].mxu0 }
 0x591   : > { %v5028_v52 = vpop.f32.mrb[17].mxu1  ;;  %v5063_v32 = vpop.f32.mrb[29].mxu0 }
 0x592   : > { %v5029_v42 = vadd.f32 %v5028_v52, %v5027_v43  ;;  %v5064_v3 = vadd.f32 %v5063_v32, %v5062_v62 }
 0x594   : > { %v4404_v13 = vadd.f32 %v5029_v42, %v4333_v45 }
 0x596   : > { %v4474_v37 = vadd.f32 %v5064_v3, %v4404_v13 }
 0x5a0   : > { %v4543_v20 = vpop.f32.mrb[18].mxu1 }
 0x5a1   : > { %v4544_v36 = vadd.f32 %v4543_v20, %v4474_v37  ;;  %v5173_v5 = vpop.f32.mrb[19].mxu1 }
 0x5a3   : > { %v4547_v63 = vmax.f32 %v4544_v36, 0.0 }
 0x5a5   : > { %5191 = vmatmul.mubr.msk.f32.vlgmr.msra.gmra.mrb[30].mxu0 %vm1736_vm3, %v4547_v63 }
 0x678   : > { %v4626_v15 = vpop.f32.mrb[30].mxu0 }
 0x679   : > { %v4627_v61 = vadd.f32 %v4626_v15, %v4556_v44  ;;  %v5192_v49 = vpop.f32.mrb[31].mxu0 }
 0x67b   : > { %v4631_v0 = vsel %vm4630_vm4, %v4627_v61, 0.0 }
 0x67c   : > { %4632 = vadd.xlane.f32.xlu0 %v4631_v0 }
 0x709   : > { %v4633_v56 = vpop.xlane.xlu0 %4632 }
 0x70a   : > { %v4635_v35 = vmul.f32 0.03125, %v4633_v56 }
 0x70c   : > { %v4636_v60 = vsub.f32 %v4627_v61, %v4635_v35 }
 0x70e   : > { %v4637_v16 = vmul.f32 %v4636_v60, %v4636_v60 }
 0x710   : > { %v4638_v38 = vsel %vm4630_vm4, %v4637_v16, 0.0 }
 0x711   : > { %4639 = vadd.xlane.f32.xlu1 %v4638_v38 }
 0x79e   : > { %v4640_v23 = vpop.xlane.xlu1 %4639 }
 0x79f   : > { %v4641_v11 = vmul.f32 0.03125, %v4640_v23 }
 0x7a1   : > { %v4642_v48 = vadd.f32 1e-05, %v4641_v11 }
 0x7a3   : > { %5502 = vrsqrt.f32 %v4642_v48 }
 0x7ad   : > { %v5503_v30 = vpop.eup %5502 }
 0x7ae   : > { %v4644_v40 = vmul.f32 %v5503_v30, %v4636_v60 }
 0x7b0   : > { %v4646_v17 = vmul.f32 %v4645_v26, %v4644_v40 }
 0x7b2   : > { %v4648_v24 = vadd.f32 %v4647_v47, %v4646_v17 }
 0x7b4   : > { %4649 = vst.msk [vmem:[%s432_s22] sm:$0x1] %vm4630_vm4, %v4648_v24 }
 0x7b5   : > { %5517 = shalt.err (!%p5514_p3)
}
 0x7b6   : > { %s5518_s3 = scalar_lea.hbm %s7457_s30, 16  ;;  %s5522_s22 = scalar_lea.hbm %s7513_s13, 32 }
 0x7b7   : > { %p5519_p4 = scmp.ne.s32.totalorder %s7457_s30, %s5518_s3  ;;  %p5523_p9 = scmp.lt.u32.totalorder %s7457_s30, %s7513_s13 }
 0x7b8   : > { %p5524_p10 = scmp.lt.u32.totalorder %s5522_s22, %s5518_s3  ;;  %p5526_p12 = scmp.lt.u32.totalorder %s5518_s3, %s7457_s30 }
 0x7b9   : > { %p5520_p7 = pnand %p5519_p4, %p5682_p5 }
 0x7ba   : > { %p5525_p11 = por %p5524_p10, %p5523_p9 }
 0x7bb   : > { %p5521_p8 = pneg %p5520_p7 }
 0x7bc   : > { %p5527_p13 = por %p5526_p12, %p5525_p11 }
 0x7be   : > { %p5528_p0 = pnand %p5527_p13, %p5521_p8 }
 0x7c0   : > { %5531 = shalt.err (!%p5528_p0)
}
 0x7c1   : > { %5448 = dma.vmem_to_hbm [thread:$0]  (%p5682_p5), %s7459_s23, 16, %s7457_s30, %s4651_s21  }
 0x7c2 PF: > { %p5454_p1 = scmp.ge.s32.totalorder %s5566_s28, 2  ;;  %s4675_s16 = sand.u32 1, %s5554_s25  }
 0x7c3   : > { %s4676_s29 = scalar_lea.sflag [#allocation3], %s4675_s16 }
 0x7c4   : > { %p5451_p2 = pnand %p5454_p1, %p5686_p6 }
 0x7c6   : > { %5549 = dma.done.wait (!%p5451_p2), %s4676_s29, 16  }
 0x7c7   : > { %5551 = vsyncadd (!%p5451_p2), %s4676_s29, 4294967280  ;;  %p23_p3 = scmp.ge.s32.totalorder %s5669_s14, 4   ;;  %s7527_s25 = smov %s5558_s26 }
 0x7c8   : > { %s7528_s26 = smov %s5562_s27  ;;  %s7529_s27 = smov %s5680_s17 }
 0x7c9   : > { %s7530_s28 = smov %s5669_s14  ;;  %25 = sbr.rel (!%p23_p3) target bundleno = 8 (0x8), region = 107 }
 0x7d0   :  { %4680 = vsyncpa [#allocation3], 1 }
 0x7d1   :  { %4682 = vsyncpa [#allocation3 + $0x1], 1 }

</bundles_post_ra>
